<compile_context>
chip_gen: v7x
topology: tpu7x:2x2x1
jax: 0.10.0
libtpu: 0.0.40
codegen_flags: <defaults>
</compile_context>

<pallas_src>
import functools
import numpy as np
import jax
import jax.numpy as jnp
from jax import lax
from jax.experimental import pallas as pl
from jax.experimental.pallas import tpu as pltpu

LANE = 128


def _round_up(x, m):
    return (x + m - 1) // m * m


def _bottleneck_kernel(x_ref, hal_ref, w1_ref, w2_ref, w3_ref,
                       s1_ref, b1_ref, s2_ref, b2_ref, s3_ref, b3_ref,
                       o_ref, *, h_valid, w_valid, mask_rows, mask_cols):
    # x_ref   : (1, TH, Wp, Cin_p)   bf16   main row tile (no halo)
    # hal_ref : (1, 2, Wp, Cin_p)    bf16   [row above tile, row below tile]
    # w1      : (Cin_p, P_p)         bf16
    # w2      : (3, 3*P_p, P_p)      bf16   per-kh slab, rows ordered (kw, cin)
    # w3      : (P_p, Cout_p)        bf16
    # sK/bK   : (1, C)               f32    folded BN scale / bias
    # o_ref   : (1, TH, Wp, Cout_p)  bf16
    _, TH, Wp, Cin_p = x_ref.shape
    P_p = w1_ref.shape[1]
    Cout_p = w3_ref.shape[1]
    t = pl.program_id(1)                                    # row-tile index

    s1 = s1_ref[...]
    b1 = b1_ref[...]

    # ---- conv1 (1x1) + BN1 + ReLU on the TH main rows (bf16 MXU, f32 acc) ----
    h1m = jnp.dot(x_ref[0].reshape(TH * Wp, Cin_p), w1_ref[...],
                  preferred_element_type=jnp.float32)
    h1m = jnp.maximum(h1m * s1 + b1, 0.0).reshape(TH, Wp, P_p)

    # conv2 zero-pads *h1* (not x): rows/cols outside the real image must be
    # zeroed in h1-space (conv1(0) -> relu(bn_bias) != 0).  These masks are only
    # compiled in when a padding tail actually exists (static Python `if`).
    col_ok = None
    if mask_cols:
        col_ok = lax.broadcasted_iota(jnp.int32, (1, Wp, P_p), 1) < w_valid
        h1m = jnp.where(col_ok, h1m, 0.0)
    if mask_rows:
        row_ok = (t * TH + lax.broadcasted_iota(jnp.int32, (TH, 1, P_p), 0)) < h_valid
        h1m = jnp.where(row_ok, h1m, 0.0)
    h1m = h1m.astype(jnp.bfloat16)

    # ---- conv1 + BN1 + ReLU on the 2 halo rows -------------------------------
    h1h = jnp.dot(hal_ref[0].reshape(2 * Wp, Cin_p), w1_ref[...],
                  preferred_element_type=jnp.float32)
    h1h = jnp.maximum(h1h * s1 + b1, 0.0).reshape(2, Wp, P_p)
    if mask_cols:
        h1h = jnp.where(col_ok, h1h, 0.0)
    # Halo rows lying outside the real image correspond to conv2's zero padding:
    top = jnp.where(t == 0, 0.0, h1h[0:1]).astype(jnp.bfloat16)
    bot = jnp.where((t + 1) * TH >= h_valid, 0.0, h1h[1:2]).astype(jnp.bfloat16)

    # h1 with a 1-row halo on each side: (TH+2, Wp, P_p) bf16
    h1f = jnp.concatenate([top, h1m, bot], axis=0)

    # ---- conv2 (3x3): kw-concat buffer + 3 accumulating MXU matmuls ----------
    # (pltpu.roll on the W axis could move the shifts onto the XLU; kept as
    #  concat for robustness -- these copies are small next to cat_kw itself.)
    zcol = jnp.zeros((TH + 2, 1, P_p), jnp.bfloat16)
    sh_l = jnp.concatenate([zcol, h1f[:, :Wp - 1, :]], axis=1)   # in[:, c-1] (kw=0)
    sh_r = jnp.concatenate([h1f[:, 1:, :], zcol], axis=1)        # in[:, c+1] (kw=2)
    cat_kw = jnp.concatenate([sh_l, h1f, sh_r], axis=-1)         # (TH+2, Wp, 3*P_p)

    h2 = jnp.dot(cat_kw[0:TH].reshape(TH * Wp, 3 * P_p), w2_ref[0],
                 preferred_element_type=jnp.float32)
    h2 = h2 + jnp.dot(cat_kw[1:TH + 1].reshape(TH * Wp, 3 * P_p), w2_ref[1],
                      preferred_element_type=jnp.float32)
    h2 = h2 + jnp.dot(cat_kw[2:TH + 2].reshape(TH * Wp, 3 * P_p), w2_ref[2],
                      preferred_element_type=jnp.float32)
    h2 = jnp.maximum(h2 * s2_ref[...] + b2_ref[...], 0.0).astype(jnp.bfloat16)

    # ---- conv3 (1x1) + BN3, residual add, final ReLU --------------------------
    h3 = jnp.dot(h2, w3_ref[...], preferred_element_type=jnp.float32)
    h3 = h3 * s3_ref[...] + b3_ref[...]

    # Residual re-read late from the input ref (main tile rows == output rows).
    res = x_ref[0].astype(jnp.float32).reshape(TH * Wp, Cout_p)
    o_ref[0] = jnp.maximum(h3 + res, 0.0).reshape(TH, Wp, Cout_p).astype(o_ref.dtype)


def bottleneck_forward(x_nchw, params, *, block_rows=32, keep_nhwc=False,
                       vmem_limit_bytes=None):
    """x_nchw: (N, Cin, H, W) f32 (PyTorch layout).

    Returns (N, Cout, H, W) f32, or with keep_nhwc=True the raw kernel output
    (N, Hp, Wp, Cout_p) bf16 NHWC with zero channel/row/col padding (entries at
    rows >= H or cols >= W of that array are padding garbage).

    block_rows: rows per spatial tile.  The default 32 is sized for v7x's
    64 MiB VMEM; raise to 64-128 on v5e/v6e (128 MiB) for fewer, longer steps.
    """
    w1, w2_hwio, w3, s1, b1, s2, b2, s3, b3 = params
    N, Cin, H, W = x_nchw.shape
    P = w1.shape[1]
    Cout = w3.shape[1]
    assert Cout == Cin, "downsample=None requires inplanes == planes*expansion"

    Cin_p = _round_up(Cin, LANE)          # lane-dense channel padding
    P_p = _round_up(P, LANE)
    Cout_p = Cin_p
    Wp = _round_up(W, 8)                  # layout-free reshapes need W % 8 == 0

    TH = min(block_rows, H)
    num_tiles = -(-H // TH)
    Hp = num_tiles * TH

    # NCHW f32 -> NHWC bf16, zero-pad H -> Hp, W -> Wp, C -> Cin_p.
    x = jnp.transpose(x_nchw.astype(jnp.bfloat16), (0, 2, 3, 1))
    xp = jnp.pad(x, ((0, 0), (0, Hp - H), (0, Wp - W), (0, Cin_p - Cin)))

    # 2 halo rows per tile (row above / row below): ~2/TH of the input, instead
    # of materializing overlapping (TH+2)-row tiles in HBM.
    zrow = jnp.zeros((N, 1, Wp, Cin_p), jnp.bfloat16)
    if num_tiles > 1:
        hal_top = jnp.concatenate([zrow, xp[:, TH - 1:Hp - 1:TH]], axis=1)
        hal_bot = jnp.concatenate([xp[:, TH:Hp:TH], zrow], axis=1)
    else:
        hal_top, hal_bot = zrow, zrow
    hal = jnp.stack([hal_top, hal_bot], axis=2).reshape(
        N * num_tiles, 2, Wp, Cin_p)

    # Lane-dense bf16 weights (zero-padded channels); w2 as per-kh (kw,cin) slabs.
    w1p = jnp.zeros((Cin_p, P_p), jnp.bfloat16).at[:Cin, :P].set(
        w1.astype(jnp.bfloat16))
    w2p = jnp.zeros((3, 3, P_p, P_p), jnp.bfloat16).at[:, :, :P, :P].set(
        w2_hwio.astype(jnp.bfloat16)).reshape(3, 3 * P_p, P_p)
    w3p = jnp.zeros((P_p, Cout_p), jnp.bfloat16).at[:P, :Cout].set(
        w3.astype(jnp.bfloat16))

    def _pad_vec(v, n):
        return jnp.zeros((1, n), jnp.float32).at[0, :v.shape[-1]].set(
            v.astype(jnp.float32))

    s1p, b1p = _pad_vec(s1, P_p), _pad_vec(b1, P_p)
    s2p, b2p = _pad_vec(s2, P_p), _pad_vec(b2, P_p)
    s3p, b3p = _pad_vec(s3, Cout_p), _pad_vec(b3, Cout_p)

    # Per-step VMEM footprint estimate -> explicit (non-maximal) vmem limit.
    thp2 = TH + 2
    tiles = 2 * (TH * Wp * Cin_p + 2 * Wp * Cin_p + TH * Wp * Cout_p) * 2
    weights = 2 * ((Cin_p * P_p + 9 * P_p * P_p + P_p * Cout_p) * 2
                   + (4 * P_p + 2 * Cout_p) * 4)
    temps = (thp2 * Wp * P_p * (4 + 2 + 2 + 2)      # h1 f32, h1f/sh_l/sh_r bf16
             + thp2 * Wp * 3 * P_p * 2              # cat_kw
             + TH * Wp * P_p * (4 + 2)              # h2 f32 + bf16
             + TH * Wp * Cout_p * 4)                # h3 f32
    if vmem_limit_bytes is None:
        # v7x note: pick block_rows so this stays comfortably below ~56 MiB.
        vmem_limit_bytes = int(min(max((tiles + weights + temps) * 1.4,
                                       32 * 1024 * 1024), 100 * 1024 * 1024))

    flops = N * num_tiles * 2 * ((TH + 2) * Wp * Cin_p * P_p
                                 + TH * Wp * 9 * P_p * P_p
                                 + TH * Wp * P_p * Cout_p)
    bytes_accessed = (int(xp.size) * 2 + int(hal.size) * 2
                      + N * Hp * Wp * Cout_p * 2
                      + (int(w1p.size) + int(w2p.size) + int(w3p.size)) * 2
                      + 4 * (4 * P_p + 2 * Cout_p))

    kernel = functools.partial(_bottleneck_kernel, h_valid=H, w_valid=W,
                               mask_rows=(Hp > H), mask_cols=(Wp > W))

    def _const_spec(shape):
        return pl.BlockSpec(shape, lambda n, t: (0,) * len(shape))

    out = pl.pallas_call(
        kernel,
        out_shape=jax.ShapeDtypeStruct((N, Hp, Wp, Cout_p), jnp.bfloat16),
        grid_spec=pltpu.PrefetchScalarGridSpec(
            num_scalar_prefetch=0,
            grid=(N, num_tiles),
            in_specs=[
                pl.BlockSpec((1, TH, Wp, Cin_p), lambda n, t: (n, t, 0, 0)),
                pl.BlockSpec((1, 2, Wp, Cin_p),
                             lambda n, t: (n * num_tiles + t, 0, 0, 0)),
                _const_spec((Cin_p, P_p)),               # w1  (VMEM-resident)
                _const_spec((3, 3 * P_p, P_p)),          # w2
                _const_spec((P_p, Cout_p)),              # w3
                _const_spec((1, P_p)), _const_spec((1, P_p)),        # s1, b1
                _const_spec((1, P_p)), _const_spec((1, P_p)),        # s2, b2
                _const_spec((1, Cout_p)), _const_spec((1, Cout_p)),  # s3, b3
            ],
            out_specs=pl.BlockSpec((1, TH, Wp, Cout_p),
                                   lambda n, t: (n, t, 0, 0)),
        ),
        compiler_params=pltpu.CompilerParams(
            dimension_semantics=("parallel", "parallel"),
            vmem_limit_bytes=vmem_limit_bytes),
        cost_estimate=pl.CostEstimate(flops=flops, transcendentals=0,
                                      bytes_accessed=bytes_accessed),
    )(xp, hal, w1p, w2p, w3p, s1p, b1p, s2p, b2p, s3p, b3p)

    if keep_nhwc:
        return out                                    # bf16, NHWC, padded
    out = out[:, :H, :W, :Cout].astype(jnp.float32)   # drop padding
    return jnp.transpose(out, (0, 3, 1, 2))           # -> NCHW f32


def init_params(key, inplanes, planes):
    expansion = 4
    cout = planes * expansion
    assert cout == inplanes, "downsample=None requires inplanes == planes*4"
    keys = jax.random.split(key, 15)
    eps = 1e-5

    w1 = 0.1 * jax.random.normal(keys[0], (inplanes, planes), jnp.float32)
    w2_hwio = 0.1 * jax.random.normal(keys[1], (3, 3, planes, planes), jnp.float32)
    w3 = 0.1 * jax.random.normal(keys[2], (planes, cout), jnp.float32)

    def bn(kg, kb, km, kv, c):
        gamma = 1.0 + 0.1 * jax.random.normal(kg, (c,), jnp.float32)
        beta = 0.1 * jax.random.normal(kb, (c,), jnp.float32)
        mean = 0.1 * jax.random.normal(km, (c,), jnp.float32)
        var = jnp.abs(1.0 + 0.1 * jax.random.normal(kv, (c,), jnp.float32))
        scale = gamma / jnp.sqrt(var + eps)
        bias = beta - mean * scale
        return scale, bias

    s1, b1 = bn(keys[3], keys[4], keys[5], keys[6], planes)
    s2, b2 = bn(keys[7], keys[8], keys[9], keys[10], planes)
    s3, b3 = bn(keys[11], keys[12], keys[13], keys[14], cout)
    return (w1, w2_hwio, w3, s1, b1, s2, b2, s3, b3)


def reference_forward(x_nchw, params):
    """Plain-JAX (XLA) reference with matching bf16 matmul inputs / f32 accumulation."""
    w1, w2_hwio, w3, s1, b1, s2, b2, s3, b3 = params
    xb = jnp.transpose(x_nchw.astype(jnp.bfloat16), (0, 2, 3, 1))     # NHWC, bf16
    h = jnp.einsum('nhwc,cp->nhwp', xb, w1.astype(jnp.bfloat16),
                   preferred_element_type=jnp.float32)
    h = jnp.maximum(h * s1 + b1, 0.0)
    h = lax.conv_general_dilated(h.astype(jnp.bfloat16),
                                 w2_hwio.astype(jnp.bfloat16),
                                 window_strides=(1, 1), padding='SAME',
                                 dimension_numbers=('NHWC', 'HWIO', 'NHWC'),
                                 preferred_element_type=jnp.float32)
    h = jnp.maximum(h * s2 + b2, 0.0)
    h = jnp.einsum('nhwp,pc->nhwc', h.astype(jnp.bfloat16),
                   w3.astype(jnp.bfloat16),
                   preferred_element_type=jnp.float32)
    h = h * s3 + b3
    out = jnp.maximum(h + xb.astype(jnp.float32), 0.0)
    # The Pallas kernel stores its output in bf16 -- match that rounding here.
    out = out.astype(jnp.bfloat16).astype(jnp.float32)
    return jnp.transpose(out, (0, 3, 1, 2))


if __name__ == "__main__":
    # downsample=None + expansion=4  =>  inplanes = planes * 4.
    # H=18, W=14 with block_rows=8 exercise: multiple row tiles + halo rows,
    # the H % TH != 0 row tail, and the W % 8 != 0 column padding path.
    N, inplanes, planes, H, W = 2, 32, 8, 18, 14

    key = jax.random.PRNGKey(0)
    k_x, k_p = jax.random.split(key)
    x = jax.random.normal(k_x, (N, inplanes, H, W), jnp.float32)       # NCHW input
    params = init_params(k_p, inplanes, planes)

    out = jax.block_until_ready(bottleneck_forward(x, params, block_rows=8))
    ref = jax.block_until_ready(reference_forward(x, params))
    np.testing.assert_allclose(np.asarray(out), np.asarray(ref),
                               rtol=1e-2, atol=1e-2)

    print("KERNEL_OK")
</pallas_src>

<mosaic_0001>
module attributes {stable_mosaic.version = 11 : i64} {
  func.func @_bottleneck_kernel(%arg0: i32, %arg1: i32, %arg2: memref<1x8x16x128xbf16, #tpu.memory_space<vmem>>, %arg3: memref<1x2x16x128xbf16, #tpu.memory_space<vmem>>, %arg4: memref<128x128xbf16, #tpu.memory_space<vmem>>, %arg5: memref<3x384x128xbf16, #tpu.memory_space<vmem>>, %arg6: memref<128x128xbf16, #tpu.memory_space<vmem>>, %arg7: memref<1x128xf32, #tpu.memory_space<vmem>>, %arg8: memref<1x128xf32, #tpu.memory_space<vmem>>, %arg9: memref<1x128xf32, #tpu.memory_space<vmem>>, %arg10: memref<1x128xf32, #tpu.memory_space<vmem>>, %arg11: memref<1x128xf32, #tpu.memory_space<vmem>>, %arg12: memref<1x128xf32, #tpu.memory_space<vmem>>, %arg13: memref<1x8x16x128xbf16, #tpu.memory_space<vmem>>) attributes {dimension_semantics = [#tpu.dimension_semantics<parallel>, #tpu.dimension_semantics<parallel>], iteration_bounds = array<i64: 2, 3>, scalar_prefetch = 0 : i64, scratch_operands = 0 : i64, tpu.core_type = #tpu.core_type<tc>, window_params = [{transform_indices = @transform_0, window_bounds = array<i64: 1, 8, 16, 128>}, {transform_indices = @transform_1, window_bounds = array<i64: 1, 2, 16, 128>}, {pipeline_mode = #tpu.pipeline_mode<synchronous>, transform_indices = @transform_2, window_bounds = array<i64: 128, 128>}, {pipeline_mode = #tpu.pipeline_mode<synchronous>, transform_indices = @transform_3, window_bounds = array<i64: 3, 384, 128>}, {pipeline_mode = #tpu.pipeline_mode<synchronous>, transform_indices = @transform_4, window_bounds = array<i64: 128, 128>}, {pipeline_mode = #tpu.pipeline_mode<synchronous>, transform_indices = @transform_5, window_bounds = array<i64: 1, 128>}, {pipeline_mode = #tpu.pipeline_mode<synchronous>, transform_indices = @transform_6, window_bounds = array<i64: 1, 128>}, {pipeline_mode = #tpu.pipeline_mode<synchronous>, transform_indices = @transform_7, window_bounds = array<i64: 1, 128>}, {pipeline_mode = #tpu.pipeline_mode<synchronous>, transform_indices = @transform_8, window_bounds = array<i64: 1, 128>}, {pipeline_mode = #tpu.pipeline_mode<synchronous>, transform_indices = @transform_9, window_bounds = array<i64: 1, 128>}, {pipeline_mode = #tpu.pipeline_mode<synchronous>, transform_indices = @transform_10, window_bounds = array<i64: 1, 128>}, {transform_indices = @transform_11, window_bounds = array<i64: 1, 8, 16, 128>}]} {
    %c0 = arith.constant 0 : index
    %c0_0 = arith.constant 0 : index
    %0 = vector.load %arg7[%c0, %c0_0] : memref<1x128xf32, #tpu.memory_space<vmem>>, vector<1x128xf32>
    %c0_1 = arith.constant 0 : index
    %c0_2 = arith.constant 0 : index
    %1 = vector.load %arg8[%c0_1, %c0_2] : memref<1x128xf32, #tpu.memory_space<vmem>>, vector<1x128xf32>
    %c0_3 = arith.constant 0 : index
    %c0_4 = arith.constant 0 : index
    %c0_5 = arith.constant 0 : index
    %c0_6 = arith.constant 0 : index
    %2 = vector.load %arg2[%c0_3, %c0_4, %c0_5, %c0_6] : memref<1x8x16x128xbf16, #tpu.memory_space<vmem>>, vector<1x8x16x128xbf16>
    %3 = vector.shape_cast %2 : vector<1x8x16x128xbf16> to vector<8x16x128xbf16>
    %4 = vector.shape_cast %3 : vector<8x16x128xbf16> to vector<128x128xbf16>
    %c0_7 = arith.constant 0 : index
    %c0_8 = arith.constant 0 : index
    %5 = vector.load %arg4[%c0_7, %c0_8] : memref<128x128xbf16, #tpu.memory_space<vmem>>, vector<128x128xbf16>
    %cst = arith.constant dense<0.000000e+00> : vector<128x128xf32>
    %6 = tpu.matmul %4, %5, %cst {dimension_numbers = #tpu.dot_dimension_numbers<[1], [0], [0], [1], [0, 0, 1, 1], [], []>} : vector<128x128xbf16>, vector<128x128xbf16>, vector<128x128xf32> -> vector<128x128xf32>
    %7 = vector.broadcast %0 : vector<1x128xf32> to vector<128x128xf32>
    %8 = arith.mulf %6, %7 : vector<128x128xf32>
    %9 = vector.broadcast %1 : vector<1x128xf32> to vector<128x128xf32>
    %10 = arith.addf %8, %9 : vector<128x128xf32>
    %cst_9 = arith.constant 0.000000e+00 : f32
    %11 = vector.broadcast %cst_9 : f32 to vector<128x128xf32>
    %12 = arith.maximumf %10, %11 : vector<128x128xf32>
    %13 = vector.shape_cast %12 : vector<128x128xf32> to vector<8x16x128xf32>
    %14 = tpu.iota {dimensions = array<i32: 1>} : vector<1x16x128xi32>
    %c14_i32 = arith.constant 14 : i32
    %15 = vector.broadcast %c14_i32 : i32 to vector<1x16x128xi32>
    %16 = arith.cmpi slt, %14, %15 : vector<1x16x128xi32>
    %cst_10 = arith.constant 0.000000e+00 : f32
    %17 = vector.shape_cast %16 : vector<1x16x128xi1> to vector<1x16x128xi1>
    %18 = vector.broadcast %17 : vector<1x16x128xi1> to vector<8x16x128xi1>
    %19 = vector.broadcast %cst_10 : f32 to vector<8x16x128xf32>
    %20 = arith.select %18, %13, %19 : vector<8x16x128xi1>, vector<8x16x128xf32>
    %c8_i32 = arith.constant 8 : i32
    %21 = arith.muli %arg1, %c8_i32 : i32
    %22 = tpu.iota {dimensions = array<i32: 0>} : vector<8x1x128xi32>
    %23 = vector.broadcast %21 : i32 to vector<8x1x128xi32>
    %24 = arith.addi %23, %22 : vector<8x1x128xi32>
    %c18_i32 = arith.constant 18 : i32
    %25 = vector.broadcast %c18_i32 : i32 to vector<8x1x128xi32>
    %26 = arith.cmpi slt, %24, %25 : vector<8x1x128xi32>
    %cst_11 = arith.constant 0.000000e+00 : f32
    %27 = vector.shape_cast %26 : vector<8x1x128xi1> to vector<8x1x128xi1>
    %28 = vector.broadcast %27 : vector<8x1x128xi1> to vector<8x16x128xi1>
    %29 = vector.broadcast %cst_11 : f32 to vector<8x16x128xf32>
    %30 = arith.select %28, %20, %29 : vector<8x16x128xi1>, vector<8x16x128xf32>
    %31 = arith.truncf %30 : vector<8x16x128xf32> to vector<8x16x128xbf16>
    %c0_12 = arith.constant 0 : index
    %c0_13 = arith.constant 0 : index
    %c0_14 = arith.constant 0 : index
    %c0_15 = arith.constant 0 : index
    %32 = vector.load %arg3[%c0_12, %c0_13, %c0_14, %c0_15] : memref<1x2x16x128xbf16, #tpu.memory_space<vmem>>, vector<1x2x16x128xbf16>
    %33 = vector.shape_cast %32 : vector<1x2x16x128xbf16> to vector<2x16x128xbf16>
    %34 = vector.shape_cast %33 : vector<2x16x128xbf16> to vector<32x128xbf16>
    %c0_16 = arith.constant 0 : index
    %c0_17 = arith.constant 0 : index
    %35 = vector.load %arg4[%c0_16, %c0_17] : memref<128x128xbf16, #tpu.memory_space<vmem>>, vector<128x128xbf16>
    %cst_18 = arith.constant dense<0.000000e+00> : vector<32x128xf32>
    %36 = tpu.matmul %34, %35, %cst_18 {dimension_numbers = #tpu.dot_dimension_numbers<[1], [0], [0], [1], [0, 0, 1, 1], [], []>} : vector<32x128xbf16>, vector<128x128xbf16>, vector<32x128xf32> -> vector<32x128xf32>
    %37 = vector.broadcast %0 : vector<1x128xf32> to vector<32x128xf32>
    %38 = arith.mulf %36, %37 : vector<32x128xf32>
    %39 = vector.broadcast %1 : vector<1x128xf32> to vector<32x128xf32>
    %40 = arith.addf %38, %39 : vector<32x128xf32>
    %cst_19 = arith.constant 0.000000e+00 : f32
    %41 = vector.broadcast %cst_19 : f32 to vector<32x128xf32>
    %42 = arith.maximumf %40, %41 : vector<32x128xf32>
    %43 = vector.shape_cast %42 : vector<32x128xf32> to vector<2x16x128xf32>
    %cst_20 = arith.constant 0.000000e+00 : f32
    %44 = vector.shape_cast %16 : vector<1x16x128xi1> to vector<1x16x128xi1>
    %45 = vector.broadcast %44 : vector<1x16x128xi1> to vector<2x16x128xi1>
    %46 = vector.broadcast %cst_20 : f32 to vector<2x16x128xf32>
    %47 = arith.select %45, %43, %46 : vector<2x16x128xi1>, vector<2x16x128xf32>
    %c0_i32 = arith.constant 0 : i32
    %48 = arith.cmpi eq, %arg1, %c0_i32 : i32
    %49 = vector.extract_strided_slice %47 {offsets = [0, 0, 0], sizes = [1, 16, 128], strides = [1, 1, 1]} : vector<2x16x128xf32> to vector<1x16x128xf32>
    %cst_21 = arith.constant 0.000000e+00 : f32
    %50 = vector.broadcast %cst_21 : f32 to vector<1x16x128xf32>
    %51 = arith.select %48, %50, %49 : vector<1x16x128xf32>
    %52 = arith.truncf %51 : vector<1x16x128xf32> to vector<1x16x128xbf16>
    %c1_i32 = arith.constant 1 : i32
    %53 = arith.addi %arg1, %c1_i32 : i32
    %c8_i32_22 = arith.constant 8 : i32
    %54 = arith.muli %53, %c8_i32_22 : i32
    %c18_i32_23 = arith.constant 18 : i32
    %55 = arith.cmpi sge, %54, %c18_i32_23 : i32
    %56 = vector.extract_strided_slice %47 {offsets = [1, 0, 0], sizes = [1, 16, 128], strides = [1, 1, 1]} : vector<2x16x128xf32> to vector<1x16x128xf32>
    %cst_24 = arith.constant 0.000000e+00 : f32
    %57 = vector.broadcast %cst_24 : f32 to vector<1x16x128xf32>
    %58 = arith.select %55, %57, %56 : vector<1x16x128xf32>
    %59 = arith.truncf %58 : vector<1x16x128xf32> to vector<1x16x128xbf16>
    %60 = tpu.concatenate %52, %31, %59 in 0 : vector<1x16x128xbf16>, vector<8x16x128xbf16>, vector<1x16x128xbf16> -> vector<10x16x128xbf16>
    %cst_25 = arith.constant 0.000000e+00 : bf16
    %61 = vector.broadcast %cst_25 : bf16 to vector<10x1x128xbf16>
    %62 = vector.extract_strided_slice %60 {offsets = [0, 0, 0], sizes = [10, 15, 128], strides = [1, 1, 1]} : vector<10x16x128xbf16> to vector<10x15x128xbf16>
    %63 = tpu.concatenate %61, %62 in 1 : vector<10x1x128xbf16>, vector<10x15x128xbf16> -> vector<10x16x128xbf16>
    %64 = vector.extract_strided_slice %60 {offsets = [0, 1, 0], sizes = [10, 15, 128], strides = [1, 1, 1]} : vector<10x16x128xbf16> to vector<10x15x128xbf16>
    %65 = tpu.concatenate %64, %61 in 1 : vector<10x15x128xbf16>, vector<10x1x128xbf16> -> vector<10x16x128xbf16>
    %66 = tpu.concatenate %63, %60, %65 in 2 : vector<10x16x128xbf16>, vector<10x16x128xbf16>, vector<10x16x128xbf16> -> vector<10x16x384xbf16>
    %67 = vector.extract_strided_slice %66 {offsets = [0, 0, 0], sizes = [8, 16, 384], strides = [1, 1, 1]} : vector<10x16x384xbf16> to vector<8x16x384xbf16>
    %68 = vector.shape_cast %67 : vector<8x16x384xbf16> to vector<128x384xbf16>
    %c0_26 = arith.constant 0 : index
    %c0_27 = arith.constant 0 : index
    %c0_28 = arith.constant 0 : index
    %69 = vector.load %arg5[%c0_26, %c0_27, %c0_28] : memref<3x384x128xbf16, #tpu.memory_space<vmem>>, vector<1x384x128xbf16>
    %70 = vector.shape_cast %69 : vector<1x384x128xbf16> to vector<384x128xbf16>
    %cst_29 = arith.constant dense<0.000000e+00> : vector<128x128xf32>
    %71 = tpu.matmul %68, %70, %cst_29 {dimension_numbers = #tpu.dot_dimension_numbers<[1], [0], [0], [1], [0, 0, 1, 1], [], []>} : vector<128x384xbf16>, vector<384x128xbf16>, vector<128x128xf32> -> vector<128x128xf32>
    %72 = vector.extract_strided_slice %66 {offsets = [1, 0, 0], sizes = [8, 16, 384], strides = [1, 1, 1]} : vector<10x16x384xbf16> to vector<8x16x384xbf16>
    %73 = vector.shape_cast %72 : vector<8x16x384xbf16> to vector<128x384xbf16>
    %c1 = arith.constant 1 : index
    %c0_30 = arith.constant 0 : index
    %c0_31 = arith.constant 0 : index
    %74 = vector.load %arg5[%c1, %c0_30, %c0_31] : memref<3x384x128xbf16, #tpu.memory_space<vmem>>, vector<1x384x128xbf16>
    %75 = vector.shape_cast %74 : vector<1x384x128xbf16> to vector<384x128xbf16>
    %cst_32 = arith.constant dense<0.000000e+00> : vector<128x128xf32>
    %76 = tpu.matmul %73, %75, %cst_32 {dimension_numbers = #tpu.dot_dimension_numbers<[1], [0], [0], [1], [0, 0, 1, 1], [], []>} : vector<128x384xbf16>, vector<384x128xbf16>, vector<128x128xf32> -> vector<128x128xf32>
    %77 = arith.addf %71, %76 : vector<128x128xf32>
    %78 = vector.extract_strided_slice %66 {offsets = [2, 0, 0], sizes = [8, 16, 384], strides = [1, 1, 1]} : vector<10x16x384xbf16> to vector<8x16x384xbf16>
    %79 = vector.shape_cast %78 : vector<8x16x384xbf16> to vector<128x384xbf16>
    %c2 = arith.constant 2 : index
    %c0_33 = arith.constant 0 : index
    %c0_34 = arith.constant 0 : index
    %80 = vector.load %arg5[%c2, %c0_33, %c0_34] : memref<3x384x128xbf16, #tpu.memory_space<vmem>>, vector<1x384x128xbf16>
    %81 = vector.shape_cast %80 : vector<1x384x128xbf16> to vector<384x128xbf16>
    %cst_35 = arith.constant dense<0.000000e+00> : vector<128x128xf32>
    %82 = tpu.matmul %79, %81, %cst_35 {dimension_numbers = #tpu.dot_dimension_numbers<[1], [0], [0], [1], [0, 0, 1, 1], [], []>} : vector<128x384xbf16>, vector<384x128xbf16>, vector<128x128xf32> -> vector<128x128xf32>
    %83 = arith.addf %77, %82 : vector<128x128xf32>
    %c0_36 = arith.constant 0 : index
    %c0_37 = arith.constant 0 : index
    %84 = vector.load %arg9[%c0_36, %c0_37] : memref<1x128xf32, #tpu.memory_space<vmem>>, vector<1x128xf32>
    %85 = vector.broadcast %84 : vector<1x128xf32> to vector<128x128xf32>
    %86 = arith.mulf %83, %85 : vector<128x128xf32>
    %c0_38 = arith.constant 0 : index
    %c0_39 = arith.constant 0 : index
    %87 = vector.load %arg10[%c0_38, %c0_39] : memref<1x128xf32, #tpu.memory_space<vmem>>, vector<1x128xf32>
    %88 = vector.broadcast %87 : vector<1x128xf32> to vector<128x128xf32>
    %89 = arith.addf %86, %88 : vector<128x128xf32>
    %cst_40 = arith.constant 0.000000e+00 : f32
    %90 = vector.broadcast %cst_40 : f32 to vector<128x128xf32>
    %91 = arith.maximumf %89, %90 : vector<128x128xf32>
    %92 = arith.truncf %91 : vector<128x128xf32> to vector<128x128xbf16>
    %c0_41 = arith.constant 0 : index
    %c0_42 = arith.constant 0 : index
    %93 = vector.load %arg6[%c0_41, %c0_42] : memref<128x128xbf16, #tpu.memory_space<vmem>>, vector<128x128xbf16>
    %cst_43 = arith.constant dense<0.000000e+00> : vector<128x128xf32>
    %94 = tpu.matmul %92, %93, %cst_43 {dimension_numbers = #tpu.dot_dimension_numbers<[1], [0], [0], [1], [0, 0, 1, 1], [], []>} : vector<128x128xbf16>, vector<128x128xbf16>, vector<128x128xf32> -> vector<128x128xf32>
    %c0_44 = arith.constant 0 : index
    %c0_45 = arith.constant 0 : index
    %95 = vector.load %arg11[%c0_44, %c0_45] : memref<1x128xf32, #tpu.memory_space<vmem>>, vector<1x128xf32>
    %96 = vector.broadcast %95 : vector<1x128xf32> to vector<128x128xf32>
    %97 = arith.mulf %94, %96 : vector<128x128xf32>
    %c0_46 = arith.constant 0 : index
    %c0_47 = arith.constant 0 : index
    %98 = vector.load %arg12[%c0_46, %c0_47] : memref<1x128xf32, #tpu.memory_space<vmem>>, vector<1x128xf32>
    %99 = vector.broadcast %98 : vector<1x128xf32> to vector<128x128xf32>
    %100 = arith.addf %97, %99 : vector<128x128xf32>
    %c0_48 = arith.constant 0 : index
    %c0_49 = arith.constant 0 : index
    %c0_50 = arith.constant 0 : index
    %c0_51 = arith.constant 0 : index
    %101 = vector.load %arg2[%c0_48, %c0_49, %c0_50, %c0_51] : memref<1x8x16x128xbf16, #tpu.memory_space<vmem>>, vector<1x8x16x128xbf16>
    %102 = vector.shape_cast %101 : vector<1x8x16x128xbf16> to vector<8x16x128xbf16>
    %103 = arith.extf %102 : vector<8x16x128xbf16> to vector<8x16x128xf32>
    %104 = vector.shape_cast %103 : vector<8x16x128xf32> to vector<128x128xf32>
    %105 = arith.addf %100, %104 : vector<128x128xf32>
    %cst_52 = arith.constant 0.000000e+00 : f32
    %106 = vector.broadcast %cst_52 : f32 to vector<128x128xf32>
    %107 = arith.maximumf %105, %106 : vector<128x128xf32>
    %108 = vector.shape_cast %107 : vector<128x128xf32> to vector<8x16x128xf32>
    %109 = arith.truncf %108 : vector<8x16x128xf32> to vector<8x16x128xbf16>
    %c0_53 = arith.constant 0 : index
    %c0_54 = arith.constant 0 : index
    %c0_55 = arith.constant 0 : index
    %c0_56 = arith.constant 0 : index
    %110 = vector.load %arg13[%c0_53, %c0_54, %c0_55, %c0_56] : memref<1x8x16x128xbf16, #tpu.memory_space<vmem>>, vector<1x8x16x128xbf16>
    %111 = vector.shape_cast %110 : vector<1x8x16x128xbf16> to vector<8x16x128xbf16>
    %112 = vector.shape_cast %109 : vector<8x16x128xbf16> to vector<1x8x16x128xbf16>
    tpu.vector_store %arg13[%c0_53, %c0_54, %c0_55, %c0_56], %112 {strides = array<i32>} : memref<1x8x16x128xbf16, #tpu.memory_space<vmem>>, vector<1x8x16x128xbf16>,
    return
  }
  func.func @transform_0(%arg0: i32, %arg1: i32) -> (i32, i32, i32, i32) {
    %c0_i32 = arith.constant 0 : i32
    %c0_i32_0 = arith.constant 0 : i32
    %c0_i32_1 = arith.constant 0 : i32
    return %arg0, %arg1, %c0_i32, %c0_i32_0 : i32, i32, i32, i32
  }
  func.func @transform_1(%arg0: i32, %arg1: i32) -> (i32, i32, i32, i32) {
    %c3_i32 = arith.constant 3 : i32
    %0 = arith.muli %arg0, %c3_i32 : i32
    %1 = arith.addi %0, %arg1 : i32
    %c0_i32 = arith.constant 0 : i32
    %c0_i32_0 = arith.constant 0 : i32
    %c0_i32_1 = arith.constant 0 : i32
    %c0_i32_2 = arith.constant 0 : i32
    return %1, %c0_i32, %c0_i32_0, %c0_i32_1 : i32, i32, i32, i32
  }
  func.func @transform_2(%arg0: i32, %arg1: i32) -> (i32, i32) {
    %c0_i32 = arith.constant 0 : i32
    %c0_i32_0 = arith.constant 0 : i32
    %c0_i32_1 = arith.constant 0 : i32
    return %c0_i32, %c0_i32_0 : i32, i32
  }
  func.func @transform_3(%arg0: i32, %arg1: i32) -> (i32, i32, i32) {
    %c0_i32 = arith.constant 0 : i32
    %c0_i32_0 = arith.constant 0 : i32
    %c0_i32_1 = arith.constant 0 : i32
    %c0_i32_2 = arith.constant 0 : i32
    return %c0_i32, %c0_i32_0, %c0_i32_1 : i32, i32, i32
  }
  func.func @transform_4(%arg0: i32, %arg1: i32) -> (i32, i32) {
    %c0_i32 = arith.constant 0 : i32
    %c0_i32_0 = arith.constant 0 : i32
    %c0_i32_1 = arith.constant 0 : i32
    return %c0_i32, %c0_i32_0 : i32, i32
  }
  func.func @transform_5(%arg0: i32, %arg1: i32) -> (i32, i32) {
    %c0_i32 = arith.constant 0 : i32
    %c0_i32_0 = arith.constant 0 : i32
    %c0_i32_1 = arith.constant 0 : i32
    return %c0_i32, %c0_i32_0 : i32, i32
  }
  func.func @transform_6(%arg0: i32, %arg1: i32) -> (i32, i32) {
    %c0_i32 = arith.constant 0 : i32
    %c0_i32_0 = arith.constant 0 : i32
    %c0_i32_1 = arith.constant 0 : i32
    return %c0_i32, %c0_i32_0 : i32, i32
  }
  func.func @transform_7(%arg0: i32, %arg1: i32) -> (i32, i32) {
    %c0_i32 = arith.constant 0 : i32
    %c0_i32_0 = arith.constant 0 : i32
    %c0_i32_1 = arith.constant 0 : i32
    return %c0_i32, %c0_i32_0 : i32, i32
  }
  func.func @transform_8(%arg0: i32, %arg1: i32) -> (i32, i32) {
    %c0_i32 = arith.constant 0 : i32
    %c0_i32_0 = arith.constant 0 : i32
    %c0_i32_1 = arith.constant 0 : i32
    return %c0_i32, %c0_i32_0 : i32, i32
  }
  func.func @transform_9(%arg0: i32, %arg1: i32) -> (i32, i32) {
    %c0_i32 = arith.constant 0 : i32
    %c0_i32_0 = arith.constant 0 : i32
    %c0_i32_1 = arith.constant 0 : i32
    return %c0_i32, %c0_i32_0 : i32, i32
  }
  func.func @transform_10(%arg0: i32, %arg1: i32) -> (i32, i32) {
    %c0_i32 = arith.constant 0 : i32
    %c0_i32_0 = arith.constant 0 : i32
    %c0_i32_1 = arith.constant 0 : i32
    return %c0_i32, %c0_i32_0 : i32, i32
  }
  func.func @transform_11(%arg0: i32, %arg1: i32) -> (i32, i32, i32, i32) {
    %c0_i32 = arith.constant 0 : i32
    %c0_i32_0 = arith.constant 0 : i32
    %c0_i32_1 = arith.constant 0 : i32
    return %arg0, %arg1, %c0_i32, %c0_i32_0 : i32, i32, i32, i32
  }
}

</mosaic_0001>

<bundles_post_ra>
// kernel: tpu_custom_call.1
= control target key start
LH: loop header
LB: loop body
LE: loop exit
PB: predicated region body
PF: predicated region fallthrough
CT: control target
= control target key end

     0   :  { %s5450_s0 = inlined_call_operand.hbm [shape: bf16[2,24,16,128], index: 0, kind: input, shape index: {}]   ;;  %s5451_s1 = inlined_call_operand.hbm [shape: bf16[6,2,16,128], index: 1, kind: input, shape index: {}]   ;;  %s5452_s2 = inlined_call_operand.hbm [shape: bf16[128,128], index: 2, kind: input, shape index: {}]   ;;  %s5453_s3 = inlined_call_operand.hbm [shape: bf16[3,384,128], index: 3, kind: input, shape index: {}]   ;;  %s5454_s4 = inlined_call_operand.hbm [shape: bf16[128,128], index: 4, kind: input, shape index: {}]   ;;  %s5455_s5 = inlined_call_operand.vmem [shape: f32[1,128], index: 5, kind: input, shape index: {}]   ;;  %s5456_s6 = inlined_call_operand.vmem [shape: f32[1,128], index: 6, kind: input, shape index: {}]   ;;  %s5457_s7 = inlined_call_operand.vmem [shape: f32[1,128], index: 7, kind: input, shape index: {}]   ;;  %s5458_s8 = inlined_call_operand.vmem [shape: f32[1,128], index: 8, kind: input, shape index: {}]   ;;  %s5459_s9 = inlined_call_operand.vmem [shape: f32[1,128], index: 9, kind: input, shape index: {}]   ;;  %s5460_s10 = inlined_call_operand.vmem [shape: f32[1,128], index: 10, kind: input, shape index: {}]   ;;  %s5461_s11 = inlined_call_operand.hbm [shape: bf16[2,24,16,128], index: 11, kind: output, shape index: {}]  }
   0x1   :  { %5480 = sst [smem:[#allocation24_spill]] %s5450_s0 }
   0x2   :  { %5481 = sst [smem:[#allocation25_spill]] %s5452_s2 }
   0x3   :  { %5482 = sst [smem:[#allocation26_spill]] %s5453_s3 }
   0x4   :  { %5483 = sst [smem:[#allocation27_spill]] %s5454_s4 }
   0x5   :  { %5484 = sst [smem:[#allocation28_spill]] %s5455_s5 }
   0x6   :  { %5485 = sst [smem:[#allocation29_spill]] %s5456_s6 }
   0x7   :  { %5486 = sst [smem:[#allocation30_spill]] %s5457_s7 }
   0x8   :  { %5487 = sst [smem:[#allocation31_spill]] %s5458_s8 }
   0x9   :  { %5488 = sst [smem:[#allocation32_spill]] %s5459_s9 }
   0xa   :  { %5489 = sst [smem:[#allocation33_spill]] %s5460_s10 }
   0xb   :  { %5490 = sst [smem:[#allocation34_spill]] %s5461_s11 }
   0xc   :  { %16 = vsyncpa [#allocation3], 0 }
   0xd   :  { %18 = vsyncpa [#allocation3 + $0x1], 0 }
   0xe   :  { %19 = vsyncpa [#allocation6], 0 }
   0xf   :  { %21 = vsyncpa [#allocation6 + $0x1], 0 }
  0x10   :  { %22 = vsyncpa [#allocation9], 0 }
  0x11   :  { %23 = vsyncpa [#allocation4], 0 }
  0x12   :  { %25 = vsyncpa [#allocation4 + $0x1], 0  ;;  %s4304_s17 = smov 0   ;;  %s4306_s18 = smov 0  }
  0x13   :  { %s4308_s19 = smov 0   ;;  %s4310_s20 = smov 0  }
  0x14   :  { %s4312_s21 = smov 0   ;;  %s4314_s22 = smov 0  }
  0x15   :  { %s4316_s23 = smov 0   ;;  %s4318_s24 = smov 0  }
  0x16   :  { %s4320_s25 = smov 0   ;;  %s4322_s26 = smov 0  }
  0x17   :  { %s4324_s27 = smov 0  }
  0x18 LB: > { %5491 = sst [smem:[#allocation17_spill]] %s4204_s20  ;;  %s4358_s28 = sadd.s32 4294967295, %s4232_s27   ;;  %s4232_s27 = sphi %s4324_s27, %s31_s27   ;;  %s4228_s26 = sphi %s4322_s26, %s5574_s26   ;;  %s4224_s25 = sphi %s4320_s25, %s5573_s25   ;;  %s4220_s24 = sphi %s4318_s24, %s5572_s24   ;;  %s4216_s23 = sphi %s4316_s23, %s5564_s23   ;;  %s4212_s22 = sphi %s4314_s22, %s5571_s22   ;;  %s4208_s21 = sphi %s4312_s21, %s5570_s21   ;;  %s4204_s20 = sphi %s4310_s20, %s5569_s20   ;;  %s4200_s19 = sphi %s4308_s19, %s5568_s19   ;;  %s4196_s18 = sphi %s4306_s18, %s5567_s18   ;;  %s4192_s17 = sphi %s4304_s17, %s5566_s17  }
  0x19   : > { %5492 = sst [smem:[#allocation18_spill]] %s4216_s23  ;;  %s2862_s29 = sadd.s32 4294967294, %s4232_s27  }
  0x1a   : > { %5493 = sst [smem:[#allocation19_spill]] %s4220_s24  ;;  %p65_p0 = scmp.ne.s32.totalorder %s4208_s21, %s4204_s20 }
  0x1b   : > { %5494 = sst [smem:[#allocation20_spill]] %s4224_s25  ;;  %p5465_p1 = scmp.eq.s32.totalorder %s4358_s28, 0 }
  0x1c   : > { %p95_p2 = scmp.ne.s32.totalorder %s4196_s18, %s4192_s17  ;;  %p316_p5 = scmp.eq.s32.totalorder %s2862_s29, 5 }
  0x1d   : > { %p4368_p4 = por %p5465_p1, %p65_p0  ;;  %p2863_p7 = scmp.ge.s32.totalorder %s4232_s27, 1 }
  0x1e   : > { %p4374_p6 = por %p95_p2, %p5465_p1  ;;  %p4379_p8 = por %p316_p5, %p65_p0 }
  0x1f   : > { %s5495_s30 = scalar_select %p4368_p4, 1, 0 }
  0x20   : > { %s5496_s12 = scalar_select %p4374_p6, 1, 0 }
  0x21   : > { %s5498_s13 = scalar_select %p4379_p8, 1, 0 }
  0x22   : > { %5497 = sst [smem:[#allocation21_spill]] %s5496_s12  ;;  %p323_p9 = scmp.lt.s32.totalorder %s4232_s27, 7 }
  0x23   : > { %5499 = sst [smem:[#allocation22_spill]] %s5498_s13  ;;  %s4234_s15 = smov [#allocation7]  }
  0x24   : > { %p4384_p10 = pnand %p2863_p7, %p323_p9  ;;  %s335_s16 = sshll.u32 %s4234_s15, 4  ;;  %s4388_s16 = int_to_ptr.vmem [resolvable:$true] %s335_s16 }
  0x25   : > { %s4235_s29 = smov [#allocation8]   ;;  %s4236_s20 = smov [#allocation10]  }
  0x26   : > { %s5500_s14 = scalar_select %p4384_p10, 1, 0 }
  0x27   : > { %p3716_p11 = pneg %p4384_p10  ;;  %s348_s13 = sshll.u32 %s4235_s29, 4  ;;  %s4398_s13 = int_to_ptr.vmem [resolvable:$true] %s348_s13 }
  0x28   : > { %s4400_s11 = sshll.u32 %s4236_s20, 4  ;;  %s5502_s2 = sld [smem:[#allocation25_spill]]  ;;  %s362_s11 = int_to_ptr.vmem [resolvable:$true] %s4400_s11 }
  0x29   : > { %p4394_p12 = pnand %p3716_p11, %p5465_p1 }
  0x2b   : > { %p4410_p0 = pneg %p4394_p12 }
  0x2e   : > { %s3954_s15 = scalar_lea.hbm %s5502_s2, 1024 }
  0x2f   : > { %p3955_p13 = scmp.ne.s32.totalorder %s5502_s2, %s3954_s15  ;;  %p3961_p7 = scmp.lt.u32.totalorder %s3954_s15, %s5502_s2 }
  0x31   : > { %p3957_p2 = pnand %p4410_p0, %p3955_p13 }
  0x33   : > { %p3958_p5 = pneg %p3957_p2 }
  0x35   : > { %p3963_p9 = pnand %p3961_p7, %p3958_p5 }
  0x37   : > { %3966 = shalt.err (!%p3963_p9)
}
  0x38   : > { %s3967_s8 = scalar_lea.vmem %s4388_s16, 1024  ;;  %p3975_p8 = scmp.lt.s32.totalorder %s4388_s16, %s4388_s16 }
  0x39   : > { %p3968_p11 = scmp.ne.s32.totalorder %s4388_s16, %s3967_s8  ;;  %p3976_p6 = scmp.lt.s32.totalorder %s3967_s8, %s3967_s8 }
  0x3b   : > { %p3970_p1 = pnand %p3968_p11, %p4410_p0  ;;  %p3977_p13 = por %p3976_p6, %p3975_p8 }
  0x3d   : > { %p3971_p3 = pneg %p3970_p1 }
  0x3f   : > { %p3978_p2 = pnand %p3977_p13, %p3971_p3 }
  0x41   : > { %3981 = shalt.err (!%p3978_p2)
}
  0x42   : > { %s5474_s9 = smov 64   ;;  %s5475_s10 = smov 4  }
  0x43   : > { %3719 = dma.hbm_to_vmem [thread:$0]  (!%p4394_p12), %s5502_s2, 1024, %s4388_s16, [#allocation6], %s5474_s9, %s5474_s9, %s5475_s10  }
  0x44   : > { %s5504_s3 = sld [smem:[#allocation26_spill]] }
  0x4a   : > { %s3982_s8 = scalar_lea.hbm %s5504_s3, 9216 }
  0x4b   : > { %p3983_p1 = scmp.ne.s32.totalorder %s5504_s3, %s3982_s8  ;;  %p3989_p8 = scmp.lt.u32.totalorder %s3982_s8, %s5504_s3 }
  0x4d   : > { %p3985_p3 = pnand %p3983_p1, %p4410_p0 }
  0x4f   : > { %p3986_p6 = pneg %p3985_p3 }
  0x51   : > { %p3991_p5 = pnand %p3989_p8, %p3986_p6 }
  0x53   : > { %3994 = shalt.err (!%p3991_p5)
}
  0x54   : > { %s3995_s16 = scalar_lea.vmem %s4398_s13, 9216  ;;  %p4003_p13 = scmp.lt.s32.totalorder %s4398_s13, %s4398_s13 }
  0x55   : > { %p3996_p7 = scmp.ne.s32.totalorder %s4398_s13, %s3995_s16  ;;  %p4004_p2 = scmp.lt.s32.totalorder %s3995_s16, %s3995_s16 }
  0x57   : > { %p3998_p9 = pnand %p3996_p7, %p4410_p0  ;;  %p4005_p1 = por %p4004_p2, %p4003_p13 }
  0x59   : > { %p3999_p11 = pneg %p3998_p9 }
  0x5b   : > { %p4006_p3 = pnand %p4005_p1, %p3999_p11 }
  0x5d   : > { %4009 = shalt.err (!%p4006_p3)
}
  0x5e   : > { %3722 = dma.hbm_to_vmem [thread:$0]  (!%p4394_p12), %s5504_s3, 9216, %s4398_s13, [#allocation9], %s5474_s9, %s5474_s9, %s5475_s10  }
  0x5f   : > { %s5505_s4 = sld [smem:[#allocation27_spill]] }
  0x65   : > { %s4010_s24 = scalar_lea.hbm %s5505_s4, 1024 }
  0x66   : > { %p4011_p6 = scmp.ne.s32.totalorder %s5505_s4, %s4010_s24  ;;  %p4017_p7 = scmp.lt.u32.totalorder %s4010_s24, %s5505_s4 }
  0x68   : > { %p4013_p8 = pnand %p4011_p6, %p4410_p0 }
  0x6a   : > { %p4014_p5 = pneg %p4013_p8 }
  0x6c   : > { %p4019_p9 = pnand %p4017_p7, %p4014_p5 }
  0x6e   : > { %4022 = shalt.err (!%p4019_p9)
}
  0x6f   : > { %s4023_s16 = scalar_lea.vmem %s362_s11, 1024  ;;  %p4031_p1 = scmp.lt.s32.totalorder %s362_s11, %s362_s11 }
  0x70   : > { %p4024_p11 = scmp.ne.s32.totalorder %s362_s11, %s4023_s16  ;;  %p4032_p3 = scmp.lt.s32.totalorder %s4023_s16, %s4023_s16 }
  0x72   : > { %p4026_p13 = pnand %p4024_p11, %p4410_p0  ;;  %p4033_p4 = por %p4032_p3, %p4031_p1 }
  0x74   : > { %p4027_p2 = pneg %p4026_p13 }
  0x76   : > { %p4034_p10 = pnand %p4033_p4, %p4027_p2 }
  0x78   : > { %4037 = shalt.err (!%p4034_p10)
}
  0x79   : > { %3725 = dma.hbm_to_vmem [thread:$0]  (!%p4394_p12), %s5505_s4, 1024, %s362_s11, [#allocation9], %s5474_s9, %s5474_s9, %s5475_s10  }
  0x7a   : > { %p5473_p4 = scmp.eq.s32.totalorder %s4232_s27, 0  ;;  %p59_p10 = scmp.ne.s32.totalorder %s4212_s22, %s4208_s21 }
  0x7b   : > { %p5472_p0 = scmp.lt.s32.totalorder %s4232_s27, 6  ;;  %s393_s17 = sand.u32 1, %s4212_s22  }
  0x7c   : > { %p61_p6 = por %p5473_p4, %p59_p10  ;;  %p5506_p8 = scmp.eq.s32.totalorder %s4358_s28, 5 }
  0x7d   : > { %s2868_s23 = sshll.u32 %s393_s17, 6  ;;  %s3086_s12 = sshll.u32 %s4224_s25, 4 }
  0x7e   : > { %p4492_p5 = por %p5506_p8, %p59_p10  ;;  %s3696_s24 = smul.u32 48, %s4228_s26 }
  0x7f   : > { %s397_s15 = scalar_lea.vmem [#allocation2], %s2868_s23  ;;  %p4502_p12 = pnand %p5472_p0, %p61_p6 }
  0x80   : > { %s407_s29 = sshll.u32 %s397_s15, 4  ;;  %s404_s20 = sadd.s32 %s3696_s24, %s3086_s12  ;;  %s4498_s29 = int_to_ptr.vmem [resolvable:$true] %s407_s29 }
  0x81   : > { %s2871_s8 = sshll.u32 %s404_s20, 6  ;;  %s5509_s0 = sld [smem:[#allocation24_spill]] }
  0x82   : > { %s4511_s23 = scalar_lea.sflag [#allocation3], %s393_s17  ;;  %p4040_p9 = pneg %p4502_p12 }
  0x87   : > { %s4509_s5 = scalar_lea.hbm %s5509_s0, %s2871_s8  ;;  %s4043_s20 = scalar_lea.hbm %s5509_s0, 6144 }
  0x88   : > { %s4038_s15 = scalar_lea.hbm %s4509_s5, 1024  ;;  %p4044_p2 = scmp.lt.u32.totalorder %s4509_s5, %s5509_s0 }
  0x89   : > { %p4039_p7 = scmp.ne.s32.totalorder %s4509_s5, %s4038_s15  ;;  %p4045_p1 = scmp.lt.u32.totalorder %s4043_s20, %s4038_s15 }
  0x8a   : > { %p4047_p10 = scmp.lt.u32.totalorder %s4038_s15, %s4509_s5 }
  0x8b   : > { %p4041_p11 = pnand %p4040_p9, %p4039_p7  ;;  %p4046_p3 = por %p4045_p1, %p4044_p2 }
  0x8d   : > { %p4042_p13 = pneg %p4041_p11  ;;  %p4048_p6 = por %p4047_p10, %p4046_p3 }
  0x8f   : > { %p4049_p8 = pnand %p4048_p6, %p4042_p13 }
  0x91   : > { %4052 = shalt.err (!%p4049_p8)
}
  0x92   : > { %s4053_s17 = scalar_lea.vmem %s4498_s29, 1024  ;;  %s4239_s13 = smov [#allocation2]  }
  0x93   : > { %p4054_p7 = scmp.ne.s32.totalorder %s4498_s29, %s4053_s17  ;;  %s4058_s12 = sshll.u32 %s4239_s13, 4  ;;  %s4059_s12 = int_to_ptr.vmem [resolvable:$false] %s4058_s12 }
  0x94   : > { %s4060_s24 = scalar_lea.vmem %s4059_s12, 2048  ;;  %p4061_p4 = scmp.lt.s32.totalorder %s4498_s29, %s4059_s12 }
  0x95   : > { %p4056_p11 = pnand %p4054_p7, %p4040_p9  ;;  %p4062_p2 = scmp.lt.s32.totalorder %s4060_s24, %s4053_s17 }
  0x97   : > { %p4057_p0 = pneg %p4056_p11  ;;  %p4063_p1 = por %p4062_p2, %p4061_p4 }
  0x99   : > { %p4064_p3 = pnand %p4063_p1, %p4057_p0 }
  0x9b   : > { %4067 = shalt.err (!%p4064_p3)
}
  0x9c   : > { %3729 = dma.hbm_to_vmem [thread:$0]  (!%p4502_p12), %s4509_s5, 1024, %s4498_s29, %s4511_s23, %s5474_s9, %s5474_s9, %s5475_s10  }
  0x9d   : > { %s40_s11 = sadd.s32 1, %s4224_s25  ;;  %s43_s15 = sadd.s32 1, %s4228_s26 }
  0x9e   : > { %p41_p4 = scmp.ge.s32.totalorder %s40_s11, 3  ;;  %s75_s20 = smul.u32 3, %s4228_s26 }
  0x9f   : > { %s82_s8 = sadd.s32 1, %s4200_s19  ;;  %p89_p0 = scmp.ne.s32.totalorder %s4200_s19, %s4196_s18 }
  0xa0   : > { %s5576_s11 = smov (%p41_p4, %s40_s11), 0  ;;  %s5578_s15 = smov (!%p41_p4, %s43_s15), %s4228_s26 }
  0xa1   : > { %s48_s16 = ssub.s32 %s4224_s25, %s5576_s11  ;;  %s76_s17 = sadd.s32 %s4224_s25, %s75_s20 }
  0xa2   : > { %p45_p9 = scmp.ge.s32.totalorder %s5578_s15, 2  ;;  %p5510_p13 = scmp.eq.s32.totalorder %s4232_s27, 0 }
  0xa3   : > { %s417_s5 = sand.u32 1, %s4232_s27   ;;  %s419_s23 = sand.u32 1, %s4200_s19  }
  0xa4   : > { %p4556_p10 = por %p89_p0, %p5510_p13  ;;  %s5580_s15 = smov (%p45_p9, %s5578_s15), 0 }
  0xa5   : > { %5512 = sst [smem:[#allocation23_spill]] %s5580_s15  ;;  %s2872_s13 = sshll.u32 %s419_s23, 4 }
  0xa6   : > { %s47_s12 = ssub.s32 %s4228_s26, %s5580_s15  ;;  %s77_s24 = smul.u32 3, %s5580_s15 }
  0xa7   : > { %s49_s9 = sor.u32 %s48_s16, %s47_s12  ;;  %s3087_s7 = sshll.u32 %s76_s17, 8 }
  0xa8   : > { %p50_p12 = scmp.eq.s32.totalorder %s49_s9, 0  ;;  %s78_s20 = sadd.s32 %s77_s24, %s5576_s11 }
  0xa9   : > { %s79_s10 = ssub.s32 %s76_s17, %s78_s20  ;;  %s5513_s0 = sadd.s32 1, %s4212_s22 }
  0xaa   : > { %s4571_s2 = scalar_select %p50_p12, %s4212_s22, %s5513_s0  }
  0xab   : > { %p80_p6 = scmp.eq.s32.totalorder %s79_s10, 0  ;;  %s4576_s25 = scalar_lea.hbm %s5451_s1, %s3087_s7 }
  0xac   : > { %s421_s23 = scalar_lea.vmem [#allocation5], %s2872_s13  ;;  %p5514_p8 = scmp.lt.s32.totalorder %s4232_s27, 6 }
  0xad   : > { %s430_s15 = sshll.u32 %s421_s23, 4  ;;  %s4591_s3 = scalar_lea.sflag [#allocation6], %s417_s5  ;;  %s4589_s15 = int_to_ptr.vmem [resolvable:$true] %s430_s15 }
  0xae   : > { %p4582_p7 = pnand %p5514_p8, %p4556_p10  ;;  %s4068_s4 = scalar_lea.hbm %s4576_s25, 256 }
  0xaf   : > { %s4587_s0 = scalar_select %p80_p6, %s4200_s19, %s82_s8  }
  0xb0   : > { %p4069_p11 = scmp.ne.s32.totalorder %s4576_s25, %s4068_s4  ;;  %p4070_p2 = pneg %p4582_p7 }
  0xb1   : > { %s4073_s16 = scalar_lea.hbm %s5451_s1, 1536  ;;  %p4074_p4 = scmp.lt.u32.totalorder %s4576_s25, %s5451_s1 }
  0xb2   : > { %p4071_p1 = pnand %p4070_p2, %p4069_p11  ;;  %p4075_p0 = scmp.lt.u32.totalorder %s4073_s16, %s4068_s4 }
  0xb3   : > { %p4077_p13 = scmp.lt.u32.totalorder %s4068_s4, %s4576_s25 }
  0xb4   : > { %p4072_p3 = pneg %p4071_p1  ;;  %p4076_p9 = por %p4075_p0, %p4074_p4 }
  0xb6   : > { %p4078_p10 = por %p4077_p13, %p4076_p9 }
  0xb8   : > { %p4079_p12 = pnand %p4078_p10, %p4072_p3 }
  0xba   : > { %4082 = shalt.err (!%p4079_p12)
}
  0xbb   : > { %s4083_s8 = scalar_lea.vmem %s4589_s15, 256  ;;  %s4240_s5 = smov [#allocation5]  }
  0xbc   : > { %p4084_p6 = scmp.ne.s32.totalorder %s4589_s15, %s4083_s8  ;;  %s4088_s13 = sshll.u32 %s4240_s5, 4  ;;  %s4089_s13 = int_to_ptr.vmem [resolvable:$false] %s4088_s13 }
  0xbd   : > { %s4090_s12 = scalar_lea.vmem %s4089_s13, 512  ;;  %p4091_p1 = scmp.lt.s32.totalorder %s4589_s15, %s4089_s13 }
  0xbe   : > { %p4086_p8 = pnand %p4084_p6, %p4070_p2  ;;  %p4092_p4 = scmp.lt.s32.totalorder %s4090_s12, %s4083_s8 }
  0xc0   : > { %p4087_p11 = pneg %p4086_p8  ;;  %p4093_p0 = por %p4092_p4, %p4091_p1 }
  0xc2   : > { %p4094_p9 = pnand %p4093_p0, %p4087_p11 }
  0xc4   : > { %4097 = shalt.err (!%p4094_p9)
}
  0xc5   : > { %s5516_s24 = smov 4   ;;  %s5517_s20 = smov 64  }
  0xc6   : > { %3732 = dma.hbm_to_vmem [thread:$0]  (!%p4582_p7), %s4576_s25, 256, %s4589_s15, %s4591_s3, %s5517_s20, %s5517_s20, %s5516_s24  }
  0xc7   : > { %p5518_p2 = scmp.ne.s32.totalorder %s5500_s14, 0 }
  0xc8   : > { %s4625_s23 = sand.u32 (!%p5518_p2), 1, %s4208_s21   ;;  %p5519_p3 = scmp.ne.s32.totalorder (!%p5518_p2), %s5495_s30, 0 }
  0xc9   : > { %442 = sbr.rel (%p5518_p2) target bundleno = 1119 (0x45f), region = 64  ;;  %s2876_s4 = sshll.u32 (!%p5518_p2), %s4625_s23, 6 }
  0xca   : > { %s445_s10 = scalar_lea.sflag (!%p5518_p2), [#allocation3], %s4625_s23  ;;  %s4631_s9 = scalar_lea.vmem (!%p5518_p2), [#allocation2], %s2876_s4 }
  0xd0   : > { %4171 = dma.done.wait (%p5519_p3), %s445_s10, 1024  }
  0xd1   : > { %4173 = vsyncadd (%p5519_p3), %s445_s10, 4294966272  ;;  %s5520_s25 = sld [smem:[#allocation21_spill]]  ;;  %s453_s14 = sand.u32 1, %s4358_s28  }
  0xd2   : > { %s455_s15 = sand.u32 1, %s4196_s18   ;;  %s454_s7 = scalar_lea.sflag [#allocation6], %s453_s14 }
  0xd3   : > { %s4639_s3 = sshll.u32 %s455_s15, 4 }
  0xd4   : > { %s457_s16 = scalar_lea.vmem [#allocation5], %s4639_s3 }
  0xd7   : > { %p5521_p7 = scmp.ne.s32.totalorder %s5520_s25, 0 }
  0xd9   : > { %4175 = dma.done.wait (%p5521_p7), %s454_s7, 256  }
  0xda   : > { %4177 = vsyncadd (%p5521_p7), %s454_s7, 4294967040  ;;  %p5522_p13 = scmp.eq.s32.totalorder %s4358_s28, 0 }
  0xdc   : > { %4179 = dma.done.wait (%p5522_p13), [#allocation6], 1024   ;;  %p5523_p10 = pmov %p5522_p13 }
  0xde   : > { %4181 = vsyncadd (%p5523_p10), [#allocation6], 4294966272  ;;  %p5524_p12 = pmov %p5523_p10 }
  0xdf   : > { %p5525_p6 = pmov %p5523_p10 }
  0xe0   : > { %4183 = dma.done.wait (%p5524_p12), [#allocation9], 10240  }
  0xe1   : > { %4185 = vsyncadd (%p5525_p6), [#allocation9], 4294957056  ;;  %v3840_v0 = vld [vmem:[#allocation7] sm:$0xff]   ;;  %v3841_v1 = vld [vmem:[#allocation7 + $0x8] sm:$0xff]   ;;  %s5526_s28 = sld [smem:[#allocation18_spill]]  ;;  %v805_v44 = vlaneseq  ;;  %s5527_s12 = sld [smem:[#allocation28_spill]] }
  0xe2   : > { %3436 = vmatprep.subr.bf16.mxu0 %v3840_v0  ;;  %3468 = vmatprep.subr.bf16.mxu1 %v3840_v0  ;;  %v3842_v2 = vld [vmem:[#allocation7 + $0x10] sm:$0xff]   ;;  %v3843_v3 = vld [vmem:[#allocation7 + $0x18] sm:$0xff]   ;;  %v520_v4 = vld [vmem:[%s4631_s9] sm:$0xff]   ;;  %s5528_s10 = sld [smem:[#allocation29_spill]]  ;;  %vm1064_vm7 = vcmask 1040384   ;;  %vm1107_vm9 = vcmask 1047552  }
  0xe3   : > { %3437 = vmatpush3.bf16.msra.mxu0 %v3840_v0  ;;  %3469 = vmatpush3.bf16.msra.mxu1 %v3840_v0  ;;  %v3856_v5 = vld [vmem:[%s457_s16] sm:$0xff]   ;;  %v3845_v7 = vld [vmem:[#allocation7 + $0x28] sm:$0xff]   ;;  %v3847_v9 = vld [vmem:[#allocation7 + $0x38] sm:$0xff]   ;;  %v806_v46 = vshrl.u32 %v805_v44, 7  ;;  %vm1065_vm8 = vsmask.f32 256 }
  0xe4   : > { %3438 = vmatprep.subr.bf16.mxu0 %v3841_v1  ;;  %3470 = vmatprep.subr.bf16.mxu1 %v3841_v1  ;;  %v3844_v6 = vld [vmem:[#allocation7 + $0x20] sm:$0xff]   ;;  %v3846_v8 = vld [vmem:[#allocation7 + $0x30] sm:$0xff]   ;;  %v522_v10 = vld [vmem:[%s4631_s9 + $0x8] sm:$0xff]   ;;  %vm1108_vm10 = vsmask.f32 7424  ;;  %s5555_s15 = sld [smem:[#allocation30_spill]] }
  0xe5   : > { %3452 = vmatprep.mubr.bf16.mxu0 %v520_v4  ;;  %3484 = vmatprep.mubr.bf16.mxu1 %v3856_v5  ;;  %v524_v11 = vld [vmem:[%s4631_s9 + $0x10] sm:$0xff]   ;;  %v3858_v12 = vld [vmem:[#allocation8 + $0x100] sm:$0xff]   ;;  %v3857_v14 = vld [vmem:[%s457_s16 + $0x8] sm:$0xff]   ;;  %v4673_v48 = vadd.s32 8, %v806_v46  ;;  %s5556_s16 = sld [smem:[#allocation31_spill]]  ;;  %s5558_s13 = sld [smem:[#allocation33_spill]] }
  0xe6   : > { %v3859_v13 = vld [vmem:[#allocation8 + $0x140] sm:$0xff]   ;;  %v3861_v16 = vld [vmem:[#allocation8 + $0x108] sm:$0xff]   ;;  %v526_v18 = vld [vmem:[%s4631_s9 + $0x18] sm:$0xff]   ;;  %s2702_s7 = scalar_lea.sflag [#allocation4], %s4625_s23 }
  0xe7   : > { %3439 = vmatpush3.bf16.msra.mxu0 %v3841_v1  ;;  %3471 = vmatpush3.bf16.msra.mxu1 %v3841_v1  ;;  %v3860_v15 = vld [vmem:[#allocation8 + $0xc0] sm:$0xff]   ;;  %v3862_v17 = vld [vmem:[#allocation8 + $0x148] sm:$0xff]   ;;  %v3864_v21 = vld [vmem:[#allocation8 + $0x110] sm:$0xff]   ;;  %s2900_s30 = sshll.u32 %s5526_s28, 3  ;;  %p968_p11 = scmp.eq.s32.totalorder %s5526_s28, 0  ;;  %vm809_vm2 = vcmp.lt.s32.totalorder %v4673_v48, 14 }
  0xe8   : > { %3440 = vmatprep.subr.bf16.mxu0 %v3842_v2  ;;  %3472 = vmatprep.subr.bf16.mxu1 %v3842_v2  ;;  %v528_v19 = vld [vmem:[%s4631_s9 + $0x20] sm:$0xff]   ;;  %v3863_v20 = vld [vmem:[#allocation8 + $0xc8] sm:$0xff]   ;;  %v3865_v22 = vld [vmem:[#allocation8 + $0x150] sm:$0xff]   ;;  %s3089_s17 = sadd.s32 8, %s2900_s30  ;;  %v4667_v45 = vstv %s2900_s30  ;;  %s3106_s20 = sshll.u32 %s5526_s28, 4 }
  0xe9   : > { %v3866_v23 = vld [vmem:[#allocation8 + $0xd0] sm:$0xff]   ;;  %v530_v24 = vld [vmem:[%s4631_s9 + $0x28] sm:$0xff]   ;;  %v534_v26 = vld [vmem:[%s4631_s9 + $0x38] sm:$0xff]   ;;  %p977_p8 = scmp.ge.s32.totalorder %s3089_s17, 18  ;;  %v4671_v47 = vadd.s32 1, %v4667_v45  ;;  %vm839_vm1 = vcmp.lt.s32.totalorder %v4667_v45, 18 }
  0xea   : > { %v532_v25 = vld [vmem:[%s4631_s9 + $0x30] sm:$0xff]   ;;  %v3867_v27 = vld [vmem:[#allocation8 + $0x118] sm:$0xff]   ;;  %v3870_v30 = vld [vmem:[#allocation8 + $0x120] sm:$0xff]   ;;  %s969_s8 = scalar_select %p968_p11, 1, 0  ;;  %v4689_v53 = vadd.s32 3, %v4667_v45 }
  0xeb   : > { %3441 = vmatpush3.bf16.msra.mxu0 %v3842_v2  ;;  %3473 = vmatpush3.bf16.msra.mxu1 %v3842_v2  ;;  %v3868_v28 = vld [vmem:[#allocation8 + $0x158] sm:$0xff]   ;;  %v3871_v31 = vld [vmem:[#allocation8 + $0x160] sm:$0xff]   ;;  %v3873_v33 = vld [vmem:[#allocation8 + $0x128] sm:$0xff]   ;;  %s978_s29 = scalar_select %p977_p8, 1, 0  ;;  %vm840_vm0 = vcmp.lt.s32.totalorder %v4671_v47, 18 }
  0xec   : > { %3442 = vmatprep.subr.bf16.mxu0 %v3843_v3  ;;  %3474 = vmatprep.subr.bf16.mxu1 %v3843_v3  ;;  %v3869_v29 = vld [vmem:[#allocation8 + $0xd8] sm:$0xff]   ;;  %v3872_v32 = vld [vmem:[#allocation8 + $0xe0] sm:$0xff]   ;;  %v3874_v34 = vld [vmem:[#allocation8 + $0x168] sm:$0xff]   ;;  %v4692_v54 = vadd.s32 2, %v4667_v45  ;;  %v970_v55 = vstv %s969_s8  ;;  %v4696_v58 = vadd.s32 5, %v4667_v45  ;;  %v4699_v59 = vadd.s32 4, %v4667_v45 }
  0xed   : > { %v3875_v35 = vld [vmem:[#allocation8 + $0xe8] sm:$0xff]   ;;  %v3876_v36 = vld [vmem:[#allocation8 + $0x130] sm:$0xff]   ;;  %v3879_v39 = vld [vmem:[#allocation8 + $0x138] sm:$0xff]   ;;  %v979_v50 = vstv %s978_s29  ;;  %v4702_v60 = vadd.s32 7, %v4667_v45  ;;  %v4706_v0 = vadd.s32 6, %v4667_v45  ;;  %vm4716_vm4 = vcmp.eq.s32.totalorder %v970_v55, 1 }
  0xee   : > { %v3877_v37 = vld [vmem:[#allocation8 + $0x170] sm:$0xff]   ;;  %v3880_v40 = vld [vmem:[#allocation8 + $0x178] sm:$0xff]   ;;  %v3882_v42 = vld [vmem:[#allocation8 + $0x40] sm:$0xff]   ;;  %vm4709_vm3 = vcmp.eq.s32.totalorder %v979_v50, 1  ;;  %vm842_vm5 = vcmp.lt.s32.totalorder %v4689_v53, 18  ;;  %vm841_vm6 = vcmp.lt.s32.totalorder %v4692_v54, 18 }
  0xef   : > { %3443 = vmatpush3.bf16.msra.mxu0 %v3843_v3  ;;  %3475 = vmatpush3.bf16.msra.mxu1 %v3843_v3  ;;  %v3878_v38 = vld [vmem:[#allocation8 + $0xf0] sm:$0xff]   ;;  %v3881_v41 = vld [vmem:[#allocation8 + $0xf8] sm:$0xff]   ;;  %v3898_v43 = vld [vmem:[#allocation8 + $0x1c0] sm:$0xff]   ;;  %vm844_vm12 = vcmp.lt.s32.totalorder %v4696_v58, 18  ;;  %vm843_vm13 = vcmp.lt.s32.totalorder %v4699_v59, 18  ;;  %s5557_s29 = sld [smem:[#allocation32_spill]] }
  0xf0   : > { %3444 = vmatprep.subr.bf16.mxu0 %v3844_v6  ;;  %3476 = vmatprep.subr.bf16.mxu1 %v3844_v6  ;;  %v4678_v49 = vld [vmem:[%s5527_s12] ss:$0 sm:$0xff]  ;;  %vm4768_vm11 = vmpackc.low %vm839_vm1, %vm839_vm1  ;;  %v3884_v47 = vld [vmem:[#allocation8 + $0x48] sm:$0xff]   ;;  %s5347_s12 = scalar_lea.vmem [#allocation11], %s2876_s4  ;;  %s5559_s4 = sld [smem:[#allocation19_spill]] }
  0xf1   : > { %v4685_v51 = vld [vmem:[%s5528_s10] ss:$0 sm:$0xff]  ;;  %vm4809_vm14 = vmand %vm1064_vm7, %vm1065_vm8  ;;  %v3888_v54 = vld [vmem:[#allocation8 + $0x58] sm:$0xff]   ;;  %s2718_s28 = sshll.u32 %s5347_s12, 4  ;;  %s4241_s30 = smov [#allocation11]   ;;  %s5380_s28 = int_to_ptr.vmem [resolvable:$true] %s2718_s28 }
  0xf2   : > { %vm4822_vm15 = vmand %vm1107_vm9, %vm1108_vm10  ;;  %v3928_v2 = vld [vmem:[#allocation8 + $0x230] sm:$0xff]   ;;  %s4102_s17 = sshll.u32 %s4241_s30, 4  ;;  %s4103_s17 = int_to_ptr.vmem [resolvable:$false] %s4102_s17 }
  0xf3   : > { %3445 = vmatpush3.bf16.msra.mxu0 %v3844_v6  ;;  %3477 = vmatpush3.bf16.msra.mxu1 %v3844_v6  ;;  %vm4909_vm7 = vmpackc.low %vm841_vm6, %vm841_vm6  ;;  %p4105_p9 = scmp.lt.s32.totalorder %s5380_s28, %s4103_s17 }
  0xf4   : > { %3446 = vmatprep.subr.bf16.mxu0 %v3845_v7  ;;  %3478 = vmatprep.subr.bf16.mxu1 %v3845_v7  ;;  %vm4970_vm8 = vmpackc.low %vm842_vm5, %vm842_vm5 }
  0xf5   : > { %vm5055_vm9 = vmpackc.low %vm844_vm12, %vm844_vm12 }
  0xf6   : > { %s3697_s24 = smul.u32 48, %s5559_s4 }
  0xf7   : > { %3447 = vmatpush3.bf16.msra.mxu0 %v3845_v7  ;;  %3479 = vmatpush3.bf16.msra.mxu1 %v3845_v7 }
  0xf8   : > { %3448 = vmatprep.subr.bf16.mxu0 %v3846_v8  ;;  %3480 = vmatprep.subr.bf16.mxu1 %v3846_v8 }
  0xfb   : > { %3449 = vmatpush3.bf16.msra.mxu0 %v3846_v8  ;;  %3481 = vmatpush3.bf16.msra.mxu1 %v3846_v8 }
  0xfc   : > { %3450 = vmatprep.subr.bf16.mxu0 %v3847_v9  ;;  %3482 = vmatprep.subr.bf16.mxu1 %v3847_v9 }
  0xff   : > { %3451 = vmatpush3.bf16.msra.mxu0 %v3847_v9  ;;  %3483 = vmatpush3.bf16.msra.mxu1 %v3847_v9 }
 0x100   : > { %3180 = vmatprep.subr.bf16.mxu0 %v3858_v12  ;;  %3488 = vmatprep.subr.bf16.mxu1 %v3859_v13 }
 0x102   : > { %3453 = vmatmul.mubr.bf16.vlgmr.msra.gmra.mrb[0].mxu0 %v522_v10  ;;  %3485 = vmatmul.mubr.bf16.vlgmr.msra.gmra.mrb[0].mxu1 %v3857_v14 }
 0x103   : > { %3456 = vmatprep.mubr.bf16.mxu0 %v524_v11  ;;  %3181 = vmatpush3.bf16.msra.mxu0 %v3860_v15 }
 0x104   : > { %3489 = vmatpush3.bf16.msra.mxu1 %v3859_v13  ;;  %3182 = vmatprep.subr.bf16.mxu0 %v3861_v16 }
 0x105   : > { %3490 = vmatprep.subr.bf16.mxu1 %v3862_v17 }
 0x107   : > { %3183 = vmatpush3.bf16.msra.mxu0 %v3863_v20 }
 0x108   : > { %3491 = vmatpush3.bf16.msra.mxu1 %v3862_v17  ;;  %3184 = vmatprep.subr.bf16.mxu0 %v3864_v21 }
 0x109   : > { %3492 = vmatprep.subr.bf16.mxu1 %v3865_v22 }
 0x10a   : > { %3457 = vmatmul.mubr.bf16.gmra.mrb[4].mxu0 %v526_v18 }
 0x10b   : > { %3460 = vmatprep.mubr.bf16.mxu0 %v528_v19  ;;  %3185 = vmatpush3.bf16.msra.mxu0 %v3866_v23 }
 0x10c   : > { %3493 = vmatpush3.bf16.msra.mxu1 %v3865_v22  ;;  %3186 = vmatprep.subr.bf16.mxu0 %v3867_v27 }
 0x10d   : > { %3494 = vmatprep.subr.bf16.mxu1 %v3868_v28 }
 0x10f   : > { %3187 = vmatpush3.bf16.msra.mxu0 %v3869_v29 }
 0x110   : > { %3495 = vmatpush3.bf16.msra.mxu1 %v3868_v28  ;;  %3188 = vmatprep.subr.bf16.mxu0 %v3870_v30 }
 0x111   : > { %3496 = vmatprep.subr.bf16.mxu1 %v3871_v31 }
 0x112   : > { %3461 = vmatmul.mubr.bf16.gmra.mrb[8].mxu0 %v530_v24 }
 0x113   : > { %3464 = vmatprep.mubr.bf16.mxu0 %v532_v25  ;;  %3189 = vmatpush3.bf16.msra.mxu0 %v3872_v32 }
 0x114   : > { %3497 = vmatpush3.bf16.msra.mxu1 %v3871_v31  ;;  %3190 = vmatprep.subr.bf16.mxu0 %v3873_v33 }
 0x115   : > { %3498 = vmatprep.subr.bf16.mxu1 %v3874_v34 }
 0x117   : > { %3191 = vmatpush3.bf16.msra.mxu0 %v3875_v35 }
 0x118   : > { %3499 = vmatpush3.bf16.msra.mxu1 %v3874_v34  ;;  %3192 = vmatprep.subr.bf16.mxu0 %v3876_v36 }
 0x119   : > { %3500 = vmatprep.subr.bf16.mxu1 %v3877_v37 }
 0x11a   : > { %3465 = vmatmul.mubr.bf16.gmra.mrb[12].mxu0 %v534_v26 }
 0x11b   : > { %3193 = vmatpush3.bf16.msra.mxu0 %v3878_v38 }
 0x11c   : > { %3501 = vmatpush3.bf16.msra.mxu1 %v3877_v37  ;;  %3194 = vmatprep.subr.bf16.mxu0 %v3879_v39 }
 0x11d   : > { %3502 = vmatprep.subr.bf16.mxu1 %v3880_v40 }
 0x11f   : > { %3195 = vmatpush3.bf16.msra.mxu0 %v3881_v41 }
 0x120   : > { %3503 = vmatpush3.bf16.msra.mxu1 %v3880_v40  ;;  %3340 = vmatprep.subr.bf16.mxu0 %v3898_v43 }
 0x121   : > { %3260 = vmatprep.subr.bf16.mxu1 %v3882_v42  ;;  %v3913_v42 = vld [vmem:[#allocation8 + $0x98] sm:$0xff]  }
 0x1d5   : > { %v3454_v52 = vpop.f32.mrb[0].mxu0  ;;  %v3486_v61 = vpop.f32.mrb[0].mxu1 }
 0x1d6   : > { %v753_v56 = vmul.f32 %v3454_v52, %v4678_v49  ;;  %v682_v57 = vpop.f32.mrb[1].mxu0  ;;  %v954_v1 = vmul.f32 %v3486_v61, %v4678_v49  ;;  %v937_v3 = vpop.f32.mrb[1].mxu1 }
 0x1d7   : > { %v751_v62 = vmul.f32 %v4678_v49, %v682_v57  ;;  %v3455_v63 = vpop.f32.mrb[2].mxu0  ;;  %v952_v7 = vmul.f32 %v4678_v49, %v937_v3  ;;  %v3487_v9 = vpop.f32.mrb[2].mxu1 }
 0x1d8   : > { %v775_v4 = vadd.f32 %v4685_v51, %v753_v56  ;;  %v754_v5 = vmul.f32 %v3455_v63, %v4678_v49  ;;  %v685_v6 = vpop.f32.mrb[3].mxu0  ;;  %v4724_v12 = vadd.f32 %v4685_v51, %v954_v1  ;;  %v955_v13 = vmul.f32 %v3487_v9, %v4678_v49  ;;  %v940_v14 = vpop.f32.mrb[3].mxu1 }
 0x1d9   : > { %v773_v10 = vadd.f32 %v4685_v51, %v751_v62  ;;  %v752_v11 = vmul.f32 %v4678_v49, %v685_v6  ;;  %v4730_v17 = vadd.f32 %v4685_v51, %v952_v7  ;;  %v953_v18 = vmul.f32 %v4678_v49, %v940_v14 }
 0x1da   : > { %v791_v15 = vmax.f32 %v775_v4, 0.0  ;;  %v776_v16 = vadd.f32 %v4685_v51, %v754_v5  ;;  %v962_v21 = vmax.f32 %v4724_v12, 0.0  ;;  %v959_v22 = vadd.f32 %v4685_v51, %v955_v13 }
 0x1db   : > { %v789_v19 = vmax.f32 %v773_v10, 0.0  ;;  %v774_v20 = vadd.f32 %v4685_v51, %v752_v11  ;;  %v960_v25 = vmax.f32 %v4730_v17, 0.0  ;;  %v4740_v26 = vadd.f32 %v4685_v51, %v953_v18 }
 0x1dc   : > { %v865_v23 = vsel %vm840_vm0, %v791_v15, 0.0  ;;  %v792_v24 = vmax.f32 %v776_v16, 0.0  ;;  %v981_v30 = vsel %vm4709_vm3, 0.0, %v962_v21  ;;  %v963_v31 = vmax.f32 %v959_v22, 0.0 }
 0x1dd   : > { %v863_v27 = vsel %vm839_vm1, %v789_v19, 0.0  ;;  %v790_v28 = vmax.f32 %v774_v20, 0.0  ;;  %v3458_v29 = vpop.f32.mrb[4].mxu0  ;;  %v4755_v35 = vsel %vm4716_vm4, 0.0, %v960_v25  ;;  %v961_v36 = vmax.f32 %v4740_v26, 0.0  ;;  %v3904_v26 = vld [vmem:[#allocation8 + $0x1d0] sm:$0xff]  }
 0x1de   : > { %v817_v32 = vsel %vm809_vm2, %v792_v24, 0.0  ;;  %v757_v33 = vmul.f32 %v3458_v29, %v4678_v49  ;;  %v698_v34 = vpop.f32.mrb[5].mxu0  ;;  %v967_v1 = vsel %vm809_vm2, %v963_v31, 0.0 }
 0x1df   : > { %v866_v37 = vsel %vm840_vm0, %v817_v32, 0.0  ;;  %v4760_v38 = vpack.c.bf16 %v817_v32, %v791_v15  ;;  %v815_v39 = vsel %vm809_vm2, %v790_v28, 0.0  ;;  %v755_v40 = vmul.f32 %v4678_v49, %v698_v34  ;;  %v3459_v41 = vpop.f32.mrb[6].mxu0  ;;  %v3930_v32 = vld [vmem:[#allocation10] sm:$0xff]  }
 0x1e0   : > { %v4772_v43 = vpack.c.bf16 %v866_v37, %v865_v23  ;;  %v864_v44 = vsel %vm839_vm1, %v815_v39, 0.0  ;;  %v4776_v46 = vpack.c.bf16 %v815_v39, %v789_v19  ;;  %v779_v50 = vadd.f32 %v4685_v51, %v757_v33  ;;  %v701_v52 = vpop.f32.mrb[7].mxu0  ;;  %vm4840_vm1 = vmpackc.low %vm840_vm0, %vm840_vm0 }
 0x1e1   : > { %v879_v55 = vpack.c.bf16 %v864_v44, %v863_v27  ;;  %v777_v56 = vadd.f32 %v4685_v51, %v755_v40  ;;  %v758_v57 = vmul.f32 %v3459_v41, %v4678_v49  ;;  %v756_v61 = vmul.f32 %v4678_v49, %v701_v52  ;;  %v3936_v41 = vld [vmem:[#allocation10 + $0x30] sm:$0xff]  }
 0x1e2   : > { %v1002_v62 = vshll.u32 %v4772_v43, 16  ;;  %v795_v63 = vmax.f32 %v779_v50, 0.0  ;;  %2930 = vmatprep.mubr.msk.bf16.mxu0 %vm4768_vm11, %v4776_v46  ;;  %v999_v45 = vshrl.u32 %v4772_v43, 16  ;;  %v982_v11 = vsel %vm4709_vm3, 0.0, %v967_v1 }
 0x1e3   : > { %v992_v3 = vshrl.u32 %v879_v55, 16  ;;  %v995_v4 = vshll.u32 %v879_v55, 16  ;;  %v793_v5 = vmax.f32 %v777_v56, 0.0  ;;  %v780_v6 = vadd.f32 %v4685_v51, %v758_v57 }
 0x1e4   : > { %v869_v7 = vsel %vm842_vm5, %v795_v63, 0.0  ;;  %v778_v9 = vadd.f32 %v4685_v51, %v756_v61  ;;  %v1081_v10 = vrot.slane %v1002_v62, 1  ;;  %v4802_v24 = vpack.c.bf16 %v982_v11, %v981_v30  ;;  %v3901_v11 = vld [vmem:[#allocation8 + $0x1c8] sm:$0xff]  }
 0x1e5   : > { %v867_v13 = vsel %vm841_vm6, %v793_v5, 0.0  ;;  %v796_v14 = vmax.f32 %v780_v6, 0.0  ;;  %v3462_v15 = vpop.f32.mrb[8].mxu0  ;;  %v994_v16 = vrot.slane %v992_v3, 7  ;;  %v1079_v18 = vrot.slane %v995_v4, 1  ;;  %v3899_v6 = vld [vmem:[#allocation8 + $0x180] sm:$0xff]  }
 0x1e6   : > { %v794_v19 = vmax.f32 %v778_v9, 0.0  ;;  %v761_v20 = vmul.f32 %v3462_v15, %v4678_v49  ;;  %v714_v22 = vpop.f32.mrb[9].mxu0  ;;  %v1082_v23 = vor.u32 %v1081_v10, %v999_v45  ;;  %vm846_vm0 = vcmp.lt.s32.totalorder %v4702_v60, 18 }
 0x1e7   : > { %v821_v27 = vsel %vm809_vm2, %v796_v14, 0.0  ;;  %v759_v28 = vmul.f32 %v4678_v49, %v714_v22  ;;  %v3463_v29 = vpop.f32.mrb[10].mxu0  ;;  %v997_v31 = vor.u32 %v995_v4, %v994_v16  ;;  %v1080_v33 = vor.u32 %v1079_v18, %v992_v3  ;;  %v3883_v4 = vld [vmem:[#allocation8] sm:$0xff]   ;;  %v3925_v3 = vld [vmem:[#allocation8 + $0x218] sm:$0xff]  }
 0x1e8   : > { %v870_v34 = vsel %vm842_vm5, %v821_v27, 0.0  ;;  %v4815_v37 = vpack.c.bf16 %v821_v27, %v795_v63  ;;  %v819_v30 = vsel %vm809_vm2, %v794_v19, 0.0  ;;  %v783_v39 = vadd.f32 %v4685_v51, %v761_v20  ;;  %v717_v40 = vpop.f32.mrb[11].mxu0  ;;  %vm2976_vm5 = vmneg %vm4716_vm4 }
 0x1e9   : > { %v4826_v44 = vpack.c.bf16 %v870_v34, %v869_v7  ;;  %v868_v50 = vsel %vm841_vm6, %v819_v30, 0.0  ;;  %v4830_v52 = vpack.c.bf16 %v819_v30, %v793_v5  ;;  %v781_v55 = vadd.f32 %v4685_v51, %v759_v28 }
 0x1ea   : > { %v4833_v56 = vpack.c.bf16 %v868_v50, %v867_v13  ;;  %v799_v57 = vmax.f32 %v783_v39, 0.0  ;;  %v762_v61 = vmul.f32 %v3463_v29, %v4678_v49  ;;  %v760_v63 = vmul.f32 %v4678_v49, %v717_v40  ;;  %v3886_v39 = vld [vmem:[#allocation8 + $0x50] sm:$0xff]  }
 0x1eb   : > { %v797_v5 = vmax.f32 %v781_v55, 0.0  ;;  %v4846_v7 = vsel %vm4809_vm14, 0, %v997_v31  ;;  %v4850_v9 = vsel %vm4822_vm15, %v1080_v33, 0  ;;  %v4854_v10 = vsel %vm4822_vm15, %v1082_v23, 0  ;;  %v3902_v31 = vld [vmem:[#allocation8 + $0x188] sm:$0xff]  }
 0x1ec   : > { %v873_v13 = vsel %vm844_vm12, %v799_v57, 0.0  ;;  %v784_v14 = vadd.f32 %v4685_v51, %v762_v61  ;;  %v782_v15 = vadd.f32 %v4685_v51, %v760_v63  ;;  %1394 = vmatmul.mubr.bf16.vlgmr.msra.gmra.mrb[16].mxu0 %v4846_v7  ;;  %3504 = vmatprep.mubr.bf16.mxu1 %v4850_v9  ;;  %v4865_v16 = vpack.c.bf16 %v967_v1, %v962_v21  ;;  %v3885_v1 = vld [vmem:[#allocation8 + $0x8] sm:$0xff]  }
 0x1ed   : > { %v871_v18 = vsel %vm843_vm13, %v797_v5, 0.0  ;;  %2933 = vmatprep.mubr.msk.bf16.mxu0 %vm4840_vm1, %v4760_v38  ;;  %3505 = vmatmul.mubr.bf16.vlgmr.msra.gmra.mrb[4].mxu1 %v4854_v10  ;;  %v3466_v19 = vpop.f32.mrb[12].mxu0  ;;  %v1001_v20 = vrot.slane %v999_v45, 7  ;;  %v1006_v22 = vshrl.u32 %v4833_v56, 16  ;;  %v1009_v23 = vshll.u32 %v4833_v56, 16  ;;  %v3891_v56 = vld [vmem:[#allocation8 + $0x20] sm:$0xff]  }
 0x1ee   : > { %v800_v27 = vmax.f32 %v784_v14, 0.0  ;;  %v798_v28 = vmax.f32 %v782_v15, 0.0  ;;  %3261 = vmatpush3.bf16.msra.mxu1 %v3883_v4  ;;  %v765_v12 = vmul.f32 %v3466_v19, %v4678_v49  ;;  %v730_v21 = vpop.f32.mrb[13].mxu0  ;;  %v965_v29 = vsel %vm809_vm2, %v961_v36, 0.0  ;;  %3341 = vmatpush3.bf16.msra.mxu0 %v3899_v6  ;;  %v3933_v19 = vld [vmem:[#allocation10 + $0x18] sm:$0xff]  }
 0x1ef   : > { %v763_v45 = vmul.f32 %v4678_v49, %v730_v21  ;;  %3262 = vmatprep.subr.bf16.mxu1 %v3884_v47  ;;  %v3467_v33 = vpop.f32.mrb[14].mxu0  ;;  %v1004_v34 = vor.u32 %v1002_v62, %v1001_v20  ;;  %v1083_v30 = vrot.slane %v1009_v23, 1  ;;  %v973_v40 = vsel %vm4716_vm4, 0.0, %v965_v29  ;;  %3342 = vmatprep.subr.bf16.mxu0 %v3901_v11  ;;  %v3906_v21 = vld [vmem:[#allocation8 + $0x1d8] sm:$0xff]   ;;  %vm2978_vm4 = vmpackc.low %vm2976_vm5, %vm2976_vm5 }
 0x1f0   : > { %v825_v36 = vsel %vm809_vm2, %v800_v27, 0.0  ;;  %v823_v50 = vsel %vm809_vm2, %v798_v28, 0.0  ;;  %v787_v55 = vadd.f32 %v4685_v51, %v765_v12  ;;  %v766_v43 = vmul.f32 %v3467_v33, %v4678_v49  ;;  %v733_v62 = vpop.f32.mrb[15].mxu0  ;;  %v3905_v27 = vld [vmem:[#allocation8 + $0x190] sm:$0xff]  }
 0x1f1   : > { %v874_v61 = vsel %vm844_vm12, %v825_v36, 0.0  ;;  %v4895_v63 = vpack.c.bf16 %v825_v36, %v799_v57  ;;  %v872_v4 = vsel %vm843_vm13, %v823_v50, 0.0  ;;  %v4899_v6 = vpack.c.bf16 %v823_v50, %v797_v5  ;;  %v3887_v57 = vld [vmem:[#allocation8 + $0x10] sm:$0xff]   ;;  %vm5107_vm12 = vmpackc.low %vm846_vm0, %vm846_vm0 }
 0x1f2   : > { %v4901_v47 = vpack.c.bf16 %v874_v61, %v873_v13  ;;  %v4903_v11 = vpack.c.bf16 %v872_v4, %v871_v18  ;;  %v803_v14 = vmax.f32 %v787_v55, 0.0  ;;  %v785_v15 = vadd.f32 %v4685_v51, %v763_v45  ;;  %3263 = vmatpush3.bf16.msra.mxu1 %v3885_v1  ;;  %3343 = vmatpush3.bf16.msra.mxu0 %v3902_v31  ;;  %v3909_v55 = vld [vmem:[#allocation8 + $0x1e0] sm:$0xff]  }
 0x1f3   : > { %v788_v5 = vadd.f32 %v4685_v51, %v766_v43  ;;  %v764_v13 = vmul.f32 %v4678_v49, %v733_v62  ;;  %v4917_v18 = vsel %vm4809_vm14, 0, %v1004_v34  ;;  %v1084_v20 = vor.u32 %v1083_v30, %v1006_v22  ;;  %3264 = vmatprep.subr.bf16.mxu1 %v3886_v39  ;;  %3344 = vmatprep.subr.bf16.mxu0 %v3904_v26  ;;  %v3890_v39 = vld [vmem:[#allocation8 + $0x60] sm:$0xff]  }
 0x1f4   : > { %v801_v28 = vmax.f32 %v785_v15, 0.0  ;;  %vm845_vm6 = vcmp.lt.s32.totalorder %v4706_v0, 18  ;;  %1402 = vmatmul.mubr.bf16.gmra.mrb[20].mxu0 %v4917_v18  ;;  %v4924_v12 = vpack.c.bf16 %v973_v40, %v4755_v35  ;;  %v4928_v49 = vpack.c.bf16 %v965_v29, %v960_v25  ;;  %v3889_v29 = vld [vmem:[#allocation8 + $0x18] sm:$0xff]  }
 0x1f5   : > { %v804_v1 = vmax.f32 %v788_v5, 0.0  ;;  %v786_v31 = vadd.f32 %v4685_v51, %v764_v13  ;;  %v4933_v45 = vsel %vm4822_vm15, %v1084_v20, 0  ;;  %2936 = vmatprep.mubr.msk.bf16.mxu0 %vm4909_vm7, %v4830_v52  ;;  %v877_v35 = vsel %vm846_vm0, %v803_v14, 0.0  ;;  %v3907_v40 = vld [vmem:[#allocation8 + $0x198] sm:$0xff]   ;;  %v3892_v20 = vld [vmem:[#allocation8 + $0x68] sm:$0xff]   ;;  %vm5086_vm10 = vmpackc.low %vm845_vm6, %vm845_vm6 }
 0x1f6   : > { %3508 = vmatprep.mubr.bf16.mxu1 %v4933_v45  ;;  %v1013_v17 = vshrl.u32 %v4826_v44, 16  ;;  %v1016_v25 = vshll.u32 %v4826_v44, 16  ;;  %3265 = vmatpush3.bf16.msra.mxu1 %v3887_v57  ;;  %v875_v51 = vsel %vm845_vm6, %v801_v28, 0.0  ;;  %v1008_v30 = vrot.slane %v1006_v22, 7 }
 0x1f7   : > { %v829_v33 = vsel %vm809_vm2, %v804_v1, 0.0  ;;  %v802_v34 = vmax.f32 %v786_v31, 0.0  ;;  %3266 = vmatprep.subr.bf16.mxu1 %v3888_v54  ;;  %3345 = vmatpush3.bf16.msra.mxu0 %v3905_v27  ;;  %v1023_v50 = vshll.u32 %v4903_v11, 16  ;;  %v1020_v61 = vshrl.u32 %v4903_v11, 16  ;;  %v3911_v31 = vld [vmem:[#allocation8 + $0x1e8] sm:$0xff]  }
 0x1f8   : > { %v878_v26 = vsel %vm846_vm0, %v829_v33, 0.0  ;;  %v4951_v44 = vpack.c.bf16 %v829_v33, %v803_v14  ;;  %v1085_v36 = vrot.slane %v1016_v25, 1  ;;  %3346 = vmatprep.subr.bf16.mxu0 %v3906_v21  ;;  %v1011_v22 = vor.u32 %v1009_v23, %v1008_v30 }
 0x1f9   : > { %v4954_v43 = vpack.c.bf16 %v878_v26, %v877_v35  ;;  %v827_v62 = vsel %vm809_vm2, %v802_v34, 0.0  ;;  %v1087_v57 = vrot.slane %v1023_v50, 1  ;;  %v1030_v13 = vshll.u32 %v4901_v47, 16  ;;  %vm5010_vm2 = vmpackc.low %vm843_vm13, %vm843_vm13 }
 0x1fa   : > { %v876_v4 = vsel %vm845_vm6, %v827_v62, 0.0  ;;  %v4963_v14 = vpack.c.bf16 %v827_v62, %v801_v28  ;;  %v1086_v15 = vor.u32 %v1085_v36, %v1013_v17  ;;  %3267 = vmatpush3.bf16.msra.mxu1 %v3889_v29  ;;  %v4978_v5 = vsel %vm4809_vm14, 0, %v1011_v22  ;;  %v3910_v28 = vld [vmem:[#allocation8 + $0x1a0] sm:$0xff]   ;;  %v3893_v29 = vld [vmem:[#allocation8 + $0x28] sm:$0xff]   ;;  %v3895_v62 = vld [vmem:[#allocation8 + $0x30] sm:$0xff]  }
 0x1fb   : > { %v4974_v23 = vpack.c.bf16 %v876_v4, %v875_v51  ;;  %3268 = vmatprep.subr.bf16.mxu1 %v3890_v39  ;;  %v1015_v54 = vrot.slane %v1013_v17, 7  ;;  %3347 = vmatpush3.bf16.msra.mxu0 %v3907_v40  ;;  %v1088_v27 = vor.u32 %v1087_v57, %v1020_v61  ;;  %v1089_v21 = vrot.slane %v1030_v13, 1  ;;  %v3894_v39 = vld [vmem:[#allocation8 + $0x70] sm:$0xff]  }
 0x1fc   : > { %v4983_v53 = vsel %vm4822_vm15, %v1086_v15, 0  ;;  %1410 = vmatmul.mubr.bf16.gmra.mrb[24].mxu0 %v4978_v5  ;;  %3348 = vmatprep.subr.bf16.mxu0 %v3909_v55  ;;  %v1027_v17 = vshrl.u32 %v4901_v47, 16  ;;  %v988_v51 = vshll.u32 %v4924_v12, 16  ;;  %v5478_v26 = vshll.u32 %v4954_v43, 16  ;;  %v3896_v15 = vld [vmem:[#allocation8 + $0x78] sm:$0xff]  }
 0x1fd   : > { %3509 = vmatmul.mubr.bf16.gmra.mrb[8].mxu1 %v4983_v53  ;;  %2939 = vmatprep.mubr.msk.bf16.mxu0 %vm4970_vm8, %v4815_v37  ;;  %v5479_v1 = vshll.u32 %v4974_v23, 16  ;;  %v4995_v35 = vsel %vm4822_vm15, %v1088_v27, 0  ;;  %v1018_v33 = vor.u32 %v1016_v25, %v1015_v54  ;;  %v1034_v34 = vshrl.u32 %v4974_v23, 16  ;;  %v3914_v27 = vld [vmem:[#allocation8 + $0x1f0] sm:$0xff]  }
 0x1fe   : > { %3269 = vmatpush3.bf16.msra.mxu1 %v3891_v56  ;;  %3512 = vmatprep.mubr.bf16.mxu1 %v4995_v35  ;;  %v1090_v40 = vor.u32 %v1089_v21, %v1027_v17  ;;  %v985_v55 = vshrl.u32 %v4924_v12, 16  ;;  %v1022_v57 = vrot.slane %v1020_v61, 7  ;;  %v3912_v56 = vld [vmem:[#allocation8 + $0x1a8] sm:$0xff]   ;;  %v1077_v59 = vrot.slane %v988_v51, 1 }
 0x1ff   : > { %3270 = vmatprep.subr.bf16.mxu1 %v3892_v20  ;;  %v1091_v30 = vrot.slane %v5479_v1, 1  ;;  %3349 = vmatpush3.bf16.msra.mxu0 %v3910_v28  ;;  %v5016_v22 = vsel %vm4809_vm14, 0, %v1018_v33  ;;  %v1093_v54 = vrot.slane %v5478_v26, 1  ;;  %v1048_v28 = vshrl.u32 %v4802_v24, 16 }
 0x200   : > { %3350 = vmatprep.subr.bf16.mxu0 %v3911_v31  ;;  %v5026_v20 = vsel %vm4822_vm15, %v1090_v40, 0  ;;  %v1051_v21 = vshll.u32 %v4802_v24, 16  ;;  %v5037_v61 = vor.u32 %v1077_v59, %v985_v55  ;;  %v1041_v31 = vshrl.u32 %v4954_v43, 16  ;;  %v3915_v40 = vld [vmem:[#allocation8 + $0x1b0] sm:$0xff]  }
 0x201   : > { %v1092_v36 = vor.u32 %v1091_v30, %v1034_v34  ;;  %v1050_v33 = vrot.slane %v1048_v28, 7  ;;  %v1025_v24 = vor.u32 %v1023_v50, %v1022_v57  ;;  %v1029_v58 = vrot.slane %v1027_v17, 7  ;;  %v3917_v57 = vld [vmem:[#allocation8 + $0x1b8] sm:$0xff]  }
 0x202   : > { %3271 = vmatpush3.bf16.msra.mxu1 %v3893_v29  ;;  %v3897_v29 = vld [vmem:[#allocation8 + $0x38] sm:$0xff]   ;;  %v1095_v30 = vrot.slane %v1051_v21, 1  ;;  %v1094_v59 = vor.u32 %v1093_v54, %v1041_v31  ;;  %v987_v54 = vrot.slane %v985_v55, 7  ;;  %v5551_v0 = vshll.u32 %v4974_v23, 16  ;;  %v3918_v23 = vld [vmem:[#allocation8 + $0xa0] sm:$0xff]  }
 0x203   : > { %v5020_v4 = vsel %vm4822_vm15, %v1092_v36, 0  ;;  %3272 = vmatprep.subr.bf16.mxu1 %v3894_v39  ;;  %v3900_v39 = vld [vmem:[#allocation8 + $0x80] sm:$0xff]   ;;  %3351 = vmatpush3.bf16.msra.mxu0 %v3912_v56  ;;  %v1110_v36 = vsel %vm4822_vm15, %v5037_v61, 0  ;;  %v5048_v26 = vor.u32 %v1051_v21, %v1050_v33  ;;  %v1032_v17 = vor.u32 %v1030_v13, %v1029_v58  ;;  %v3903_v21 = vld [vmem:[#allocation8 + $0x88] sm:$0xff]   ;;  %v3908_v13 = vld [vmem:[#allocation8 + $0x90] sm:$0xff]  }
 0x204   : > { %1418 = vmatmul.mubr.bf16.gmra.mrb[28].mxu0 %v5016_v22  ;;  %3352 = vmatprep.subr.bf16.mxu0 %v3914_v27  ;;  %v5050_v1 = vor.u32 %v1095_v30, %v1048_v28  ;;  %v5071_v56 = vsel %vm4822_vm15, %v1094_v59, 0  ;;  %v990_v27 = vor.u32 %v988_v51, %v987_v54  ;;  %v5554_v60 = vshll.u32 %v4954_v43, 16  ;;  %v3920_v43 = vld [vmem:[#allocation8 + $0xb0] sm:$0xff]   ;;  %v3921_v33 = vld [vmem:[#allocation8 + $0xb8] sm:$0xff]  }
 0x205   : > { %3513 = vmatmul.mubr.bf16.gmra.mrb[12].mxu1 %v5026_v20  ;;  %2942 = vmatprep.mubr.msk.bf16.mxu0 %vm5010_vm2, %v4899_v6  ;;  %v1076_v50 = vsel %vm4809_vm14, 0, %v5048_v26  ;;  %v1073_v28 = vsel %vm4809_vm14, 0, %v1032_v17  ;;  %v3937_v59 = vld [vmem:[#allocation10 + $0x38] sm:$0xff]  }
 0x206   : > { %3516 = vmatprep.mubr.bf16.mxu1 %v5020_v4  ;;  %3273 = vmatpush3.bf16.msra.mxu1 %v3895_v62  ;;  %v3916_v62 = vld [vmem:[#allocation8 + $0x1f8] sm:$0xff]   ;;  %v1119_v8 = vsel %vm4822_vm15, %v5050_v1, 0  ;;  %v1067_v47 = vsel %vm4809_vm14, 0, %v990_v27 }
 0x207   : > { %3274 = vmatprep.subr.bf16.mxu1 %v3896_v15  ;;  %v5067_v15 = vsel %vm4809_vm14, 0, %v1025_v24  ;;  %3353 = vmatpush3.bf16.msra.mxu0 %v3915_v40 }
 0x208   : > { %3354 = vmatprep.subr.bf16.mxu0 %v3916_v62 }
 0x20a   : > { %3275 = vmatpush3.bf16.msra.mxu1 %v3897_v29  ;;  %v1043_v29 = vrot.slane %v1041_v31, 7 }
 0x20b   : > { %3520 = vmatprep.subr.bf16.mxu1 %v3900_v39  ;;  %3355 = vmatpush3.bf16.msra.mxu0 %v3917_v57 }
 0x20c   : > { %1426 = vmatmul.mubr.bf16.gmra.mrb[32].mxu0 %v5067_v15  ;;  %3584 = vmatprep.subr.bf16.mxu0 %v3930_v32 }
 0x20d   : > { %3517 = vmatmul.mubr.bf16.gmra.mrb[16].mxu1 %v5071_v56  ;;  %2945 = vmatprep.mubr.msk.bf16.mxu0 %vm5055_vm9, %v4895_v63 }
 0x20e   : > { %2980 = vmatprep.mubr.msk.bf16.mxu1 %vm2978_vm4, %v4928_v49  ;;  %v1036_v49 = vrot.slane %v1034_v34, 7 }
 0x210   : > { %v1039_v12 = vor.u32 %v5551_v0, %v1036_v49 }
 0x212   : > { %v1074_v34 = vsel %vm4809_vm14, 0, %v1039_v12 }
 0x214   : > { %1434 = vmatmul.mubr.bf16.gmra.mrb[36].mxu0 %v1073_v28 }
 0x215   : > { %1732 = vmatmul.mubr.bf16.vlgmr.msra.gmra.mrb[20].mxu1 %v1067_v47  ;;  %2948 = vmatprep.mubr.msk.bf16.mxu0 %vm5086_vm10, %v4963_v14 }
 0x216   : > { %3521 = vmatpush3.bf16.msra.mxu1 %v3900_v39  ;;  %2983 = vmatprep.mubr.msk.bf16.mxu1 %vm4768_vm11, %v4776_v46  ;;  %v1046_v46 = vor.u32 %v5554_v60, %v1043_v29  ;;  %vm3047_vm11 = vmneg %vm4709_vm3 }
 0x217   : > { %3522 = vmatprep.subr.bf16.mxu1 %v3903_v21  ;;  %vm3049_vm13 = vmpackc.low %vm3047_vm11, %vm3047_vm11 }
 0x218   : > { %v1075_v31 = vsel %vm4809_vm14, 0, %v1046_v46 }
 0x21a   : > { %3523 = vmatpush3.bf16.msra.mxu1 %v3903_v21 }
 0x21b   : > { %3524 = vmatprep.subr.bf16.mxu1 %v3908_v13 }
 0x21c   : > { %1442 = vmatmul.mubr.bf16.gmra.mrb[40].mxu0 %v1074_v34 }
 0x21d   : > { %1740 = vmatmul.mubr.bf16.gmra.mrb[24].mxu1 %v4846_v7  ;;  %2951 = vmatprep.mubr.msk.bf16.mxu0 %vm5107_vm12, %v4951_v44  ;;  %v3919_v7 = vld [vmem:[#allocation8 + $0xa8] sm:$0xff]  }
 0x21e   : > { %2986 = vmatprep.mubr.msk.bf16.mxu1 %vm4840_vm1, %v4760_v38  ;;  %3525 = vmatpush3.bf16.msra.mxu1 %v3908_v13 }
 0x21f   : > { %3526 = vmatprep.subr.bf16.mxu1 %v3913_v42 }
 0x222   : > { %3527 = vmatpush3.bf16.msra.mxu1 %v3913_v42 }
 0x223   : > { %3528 = vmatprep.subr.bf16.mxu1 %v3918_v23 }
 0x224   : > { %1450 = vmatmul.mubr.bf16.gmra.mrb[44].mxu0 %v1075_v31 }
 0x225   : > { %1748 = vmatmul.mubr.bf16.gmra.mrb[28].mxu1 %v4917_v18  ;;  %3028 = vmatprep.mubr.msk.bf16.mxu0 %vm4840_vm1, %v4760_v38  ;;  %v3922_v38 = vld [vmem:[#allocation8 + $0x200] sm:$0xff]  }
 0x226   : > { %2989 = vmatprep.mubr.msk.bf16.mxu1 %vm4909_vm7, %v4830_v52  ;;  %3529 = vmatpush3.bf16.msra.mxu1 %v3918_v23 }
 0x227   : > { %3530 = vmatprep.subr.bf16.mxu1 %v3919_v7 }
 0x22a   : > { %3531 = vmatpush3.bf16.msra.mxu1 %v3919_v7 }
 0x22b   : > { %3532 = vmatprep.subr.bf16.mxu1 %v3920_v43 }
 0x22c   : > { %2119 = vmatmul.mubr.bf16.vlgmr.msra.gmra.mrb[48].mxu0 %v4917_v18  ;;  %v3934_v18 = vld [vmem:[#allocation10 + $0x20] sm:$0xff]  }
 0x22d   : > { %1756 = vmatmul.mubr.bf16.gmra.mrb[32].mxu1 %v4978_v5  ;;  %3031 = vmatprep.mubr.msk.bf16.mxu0 %vm4909_vm7, %v4830_v52  ;;  %v3924_v52 = vld [vmem:[#allocation8 + $0x210] sm:$0xff]  }
 0x22e   : > { %2992 = vmatprep.mubr.msk.bf16.mxu1 %vm4970_vm8, %v4815_v37  ;;  %3533 = vmatpush3.bf16.msra.mxu1 %v3920_v43 }
 0x22f   : > { %3534 = vmatprep.subr.bf16.mxu1 %v3921_v33  ;;  %3585 = vmatpush3.bf16.msra.mxu0 %v3930_v32 }
 0x232   : > { %3535 = vmatpush3.bf16.msra.mxu1 %v3921_v33 }
 0x233   : > { %3552 = vmatprep.subr.bf16.mxu1 %v3922_v38 }
 0x234   : > { %2127 = vmatmul.mubr.bf16.gmra.mrb[52].mxu0 %v4978_v5 }
 0x235   : > { %1764 = vmatmul.mubr.bf16.gmra.mrb[36].mxu1 %v5016_v22  ;;  %3034 = vmatprep.mubr.msk.bf16.mxu0 %vm4970_vm8, %v4815_v37  ;;  %v3923_v37 = vld [vmem:[#allocation8 + $0x208] sm:$0xff]  }
 0x236   : > { %2995 = vmatprep.mubr.msk.bf16.mxu1 %vm5010_vm2, %v4899_v6 }
 0x23c   : > { %2135 = vmatmul.mubr.bf16.gmra.mrb[56].mxu0 %v5016_v22 }
 0x23d   : > { %1772 = vmatmul.mubr.bf16.gmra.mrb[40].mxu1 %v5067_v15  ;;  %3037 = vmatprep.mubr.msk.bf16.mxu0 %vm5010_vm2, %v4899_v6  ;;  %v3932_v6 = vld [vmem:[#allocation10 + $0x10] sm:$0xff]  }
 0x23e   : > { %2998 = vmatprep.mubr.msk.bf16.mxu1 %vm5055_vm9, %v4895_v63 }
 0x244   : > { %2143 = vmatmul.mubr.bf16.gmra.mrb[60].mxu0 %v5067_v15 }
 0x245   : > { %1780 = vmatmul.mubr.bf16.gmra.mrb[44].mxu1 %v1073_v28  ;;  %3040 = vmatprep.mubr.msk.bf16.mxu0 %vm5055_vm9, %v4895_v63  ;;  %v3927_v63 = vld [vmem:[#allocation8 + $0x228] sm:$0xff]  }
 0x246   : > { %3001 = vmatprep.mubr.msk.bf16.mxu1 %vm5086_vm10, %v4963_v14 }
 0x24c   : > { %2151 = vmatmul.mubr.bf16.gmra.mrb[64].mxu0 %v1073_v28 }
 0x24d   : > { %1788 = vmatmul.mubr.bf16.gmra.mrb[48].mxu1 %v1074_v34  ;;  %3043 = vmatprep.mubr.msk.bf16.mxu0 %vm5086_vm10, %v4963_v14 }
 0x24e   : > { %3536 = vmatprep.mubr.bf16.mxu1 %v1110_v36 }
 0x254   : > { %2159 = vmatmul.mubr.bf16.gmra.mrb[68].mxu0 %v1074_v34 }
 0x255   : > { %3537 = vmatmul.mubr.bf16.vlgmr.msra.gmra.mrb[4].mxu1 %v4850_v9  ;;  %3046 = vmatprep.mubr.msk.bf16.mxu0 %vm5107_vm12, %v4951_v44  ;;  %v3926_v9 = vld [vmem:[#allocation8 + $0x220] sm:$0xff]  }
 0x256   : > { %3553 = vmatpush3.bf16.msra.mxu1 %v3922_v38  ;;  %3540 = vmatprep.mubr.bf16.mxu1 %v4854_v10 }
 0x257   : > { %3554 = vmatprep.subr.bf16.mxu1 %v3923_v37 }
 0x25a   : > { %3555 = vmatpush3.bf16.msra.mxu1 %v3923_v37 }
 0x25b   : > { %3556 = vmatprep.subr.bf16.mxu1 %v3924_v52 }
 0x25c   : > { %2167 = vmatmul.mubr.bf16.gmra.mrb[72].mxu0 %v1075_v31 }
 0x25d   : > { %3541 = vmatmul.mubr.bf16.gmra.mrb[8].mxu1 %v4933_v45  ;;  %3051 = vmatprep.mubr.msk.bf16.mxu0 %vm3049_vm13, %v4865_v16  ;;  %v3929_v16 = vld [vmem:[#allocation8 + $0x238] sm:$0xff]  }
 0x25e   : > { %3557 = vmatpush3.bf16.msra.mxu1 %v3924_v52  ;;  %3544 = vmatprep.mubr.bf16.mxu1 %v4983_v53 }
 0x25f   : > { %3558 = vmatprep.subr.bf16.mxu1 %v3925_v3 }
 0x262   : > { %3559 = vmatpush3.bf16.msra.mxu1 %v3925_v3 }
 0x263   : > { %3560 = vmatprep.subr.bf16.mxu1 %v3926_v9 }
 0x264   : > { %2175 = vmatmul.mubr.bf16.gmra.mrb[76].mxu0 %v1076_v50 }
 0x265   : > { %3545 = vmatmul.mubr.bf16.gmra.mrb[12].mxu1 %v4995_v35 }
 0x266   : > { %3561 = vmatpush3.bf16.msra.mxu1 %v3926_v9  ;;  %3548 = vmatprep.mubr.bf16.mxu1 %v5026_v20 }
 0x267   : > { %3562 = vmatprep.subr.bf16.mxu1 %v3927_v63 }
 0x26a   : > { %3563 = vmatpush3.bf16.msra.mxu1 %v3927_v63 }
 0x26b   : > { %3564 = vmatprep.subr.bf16.mxu1 %v3928_v2 }
 0x26d   : > { %3549 = vmatmul.mubr.bf16.gmra.mrb[16].mxu1 %v5020_v4 }
 0x26e   : > { %3565 = vmatpush3.bf16.msra.mxu1 %v3928_v2  ;;  %3568 = vmatprep.mubr.bf16.mxu1 %v4854_v10  ;;  %v3931_v10 = vld [vmem:[#allocation10 + $0x8] sm:$0xff]  }
 0x26f   : > { %3566 = vmatprep.subr.bf16.mxu1 %v3929_v16  ;;  %3586 = vmatprep.subr.bf16.mxu0 %v3931_v10 }
 0x270   : > { %3587 = vmatpush3.bf16.msra.mxu0 %v3931_v10 }
 0x271   : > { %3588 = vmatprep.subr.bf16.mxu0 %v3932_v6 }
 0x272   : > { %3567 = vmatpush3.bf16.msra.mxu1 %v3929_v16 }
 0x274   : > { %3589 = vmatpush3.bf16.msra.mxu0 %v3932_v6 }
 0x275   : > { %3569 = vmatmul.mubr.bf16.vlgmr.msra.gmra.mrb[4].mxu1 %v4933_v45  ;;  %3590 = vmatprep.subr.bf16.mxu0 %v3933_v19  ;;  %v3935_v45 = vld [vmem:[#allocation10 + $0x28] sm:$0xff]  }
 0x276   : > { %3572 = vmatprep.mubr.bf16.mxu1 %v4983_v53 }
 0x278   : > { %3591 = vmatpush3.bf16.msra.mxu0 %v3933_v19 }
 0x279   : > { %3592 = vmatprep.subr.bf16.mxu0 %v3934_v18 }
 0x27c   : > { %3593 = vmatpush3.bf16.msra.mxu0 %v3934_v18 }
 0x27d   : > { %3573 = vmatmul.mubr.bf16.gmra.mrb[8].mxu1 %v4995_v35  ;;  %3594 = vmatprep.subr.bf16.mxu0 %v3935_v45 }
 0x27e   : > { %3576 = vmatprep.mubr.bf16.mxu1 %v5026_v20 }
 0x280   : > { %3595 = vmatpush3.bf16.msra.mxu0 %v3935_v45 }
 0x281   : > { %3596 = vmatprep.subr.bf16.mxu0 %v3936_v41 }
 0x284   : > { %3597 = vmatpush3.bf16.msra.mxu0 %v3936_v41 }
 0x285   : > { %3577 = vmatmul.mubr.bf16.gmra.mrb[12].mxu1 %v5020_v4  ;;  %3598 = vmatprep.subr.bf16.mxu0 %v3937_v59 }
 0x286   : > { %3580 = vmatprep.mubr.bf16.mxu1 %v5071_v56 }
 0x288   : > { %3599 = vmatpush3.bf16.msra.mxu0 %v3937_v59 }
 0x28d   : > { %3581 = vmatmul.mubr.bf16.gmra.mrb[16].mxu1 %v1119_v8 }
 0x2bf   : > { %v3196_v44 = vpop.f32.mrb[16].mxu0 }
 0x2c0   : > { %v3197_v14 = vpop.f32.mrb[17].mxu0 }
 0x2c1   : > { %v3198_v48 = vadd.f32 %v3197_v14, %v3196_v44  ;;  %v3199_v5 = vpop.f32.mrb[18].mxu0 }
 0x2c2   : > { %v3200_v53 = vpop.f32.mrb[19].mxu0 }
 0x2c3   : > { %v3201_v1 = vadd.f32 %v3200_v53, %v3199_v5 }
 0x2c7   : > { %v3202_v35 = vpop.f32.mrb[20].mxu0 }
 0x2c8   : > { %v3203_v26 = vpop.f32.mrb[21].mxu0 }
 0x2c9   : > { %v3204_v25 = vadd.f32 %v3203_v26, %v3202_v35  ;;  %v3205_v22 = vpop.f32.mrb[22].mxu0 }
 0x2ca   : > { %v3206_v4 = vpop.f32.mrb[23].mxu0 }
 0x2cb   : > { %v3207_v20 = vadd.f32 %v3206_v4, %v3205_v22 }
 0x2cf   : > { %v3208_v61 = vpop.f32.mrb[24].mxu0 }
 0x2d0   : > { %v3209_v30 = vpop.f32.mrb[25].mxu0 }
 0x2d1   : > { %v3210_v24 = vadd.f32 %v3209_v30, %v3208_v61  ;;  %v3211_v39 = vpop.f32.mrb[26].mxu0 }
 0x2d2   : > { %v3212_v40 = vpop.f32.mrb[27].mxu0 }
 0x2d3   : > { %v3213_v36 = vadd.f32 %v3212_v40, %v3211_v39 }
 0x2d7   : > { %v3214_v62 = vpop.f32.mrb[28].mxu0 }
 0x2d8   : > { %v3215_v11 = vpop.f32.mrb[29].mxu0 }
 0x2d9   : > { %v5197_v50 = vadd.f32 %v3215_v11, %v3214_v62  ;;  %v3217_v8 = vpop.f32.mrb[30].mxu0 }
 0x2da   : > { %v3218_v15 = vpop.f32.mrb[31].mxu0 }
 0x2db   : > { %v5199_v58 = vadd.f32 %v3218_v15, %v3217_v8 }
 0x2df   : > { %v3220_v57 = vpop.f32.mrb[32].mxu0 }
 0x2e0   : > { %v3221_v56 = vpop.f32.mrb[33].mxu0 }
 0x2e1   : > { %v5201_v54 = vadd.f32 %v3221_v56, %v3220_v57  ;;  %v3223_v17 = vpop.f32.mrb[34].mxu0 }
 0x2e2   : > { %v3224_v27 = vpop.f32.mrb[35].mxu0 }
 0x2e3   : > { %v5203_v55 = vadd.f32 %v3224_v27, %v3223_v17 }
 0x2e7   : > { %v3226_v28 = vpop.f32.mrb[36].mxu0 }
 0x2e8   : > { %v3276_v21 = vpop.f32.mrb[20].mxu1  ;;  %v3227_v49 = vpop.f32.mrb[37].mxu0 }
 0x2e9   : > { %v3277_v47 = vpop.f32.mrb[21].mxu1  ;;  %v5205_v0 = vadd.f32 %v3227_v49, %v3226_v28  ;;  %v3229_v12 = vpop.f32.mrb[38].mxu0 }
 0x2ea   : > { %v3278_v13 = vadd.f32 %v3277_v47, %v3276_v21  ;;  %v3279_v51 = vpop.f32.mrb[22].mxu1  ;;  %v3230_v34 = vpop.f32.mrb[39].mxu0 }
 0x2eb   : > { %v3280_v29 = vpop.f32.mrb[23].mxu1  ;;  %v5207_v42 = vadd.f32 %v3230_v34, %v3229_v12 }
 0x2ec   : > { %v3619_v60 = vadd.f32 %v3278_v13, %v3198_v48  ;;  %v3281_v46 = vadd.f32 %v3280_v29, %v3279_v51 }
 0x2ee   : > { %v3625_v23 = vadd.f32 %v3281_v46, %v3201_v1 }
 0x2ef   : > { %v3232_v31 = vpop.f32.mrb[40].mxu0 }
 0x2f0   : > { %v3282_v7 = vpop.f32.mrb[24].mxu1  ;;  %v3233_v43 = vpop.f32.mrb[41].mxu0 }
 0x2f1   : > { %v3283_v33 = vpop.f32.mrb[25].mxu1  ;;  %v5209_v38 = vadd.f32 %v3233_v43, %v3232_v31  ;;  %v3235_v37 = vpop.f32.mrb[42].mxu0 }
 0x2f2   : > { %v3284_v52 = vadd.f32 %v3283_v33, %v3282_v7  ;;  %v3285_v3 = vpop.f32.mrb[26].mxu1  ;;  %v3236_v9 = vpop.f32.mrb[43].mxu0 }
 0x2f3   : > { %v3286_v63 = vpop.f32.mrb[27].mxu1  ;;  %v5211_v2 = vadd.f32 %v3236_v9, %v3235_v37 }
 0x2f4   : > { %v3616_v16 = vadd.f32 %v3284_v52, %v3204_v25  ;;  %v3287_v32 = vadd.f32 %v3286_v63, %v3285_v3 }
 0x2f6   : > { %v3622_v10 = vadd.f32 %v3287_v32, %v3207_v20 }
 0x2f7   : > { %v3238_v6 = vpop.f32.mrb[44].mxu0 }
 0x2f8   : > { %v3288_v19 = vpop.f32.mrb[28].mxu1  ;;  %v3239_v18 = vpop.f32.mrb[45].mxu0 }
 0x2f9   : > { %v3289_v45 = vpop.f32.mrb[29].mxu1  ;;  %v5213_v41 = vadd.f32 %v3239_v18, %v3238_v6  ;;  %v3241_v44 = vpop.f32.mrb[46].mxu0 }
 0x2fa   : > { %v3290_v14 = vadd.f32 %v3289_v45, %v3288_v19  ;;  %v3291_v48 = vpop.f32.mrb[30].mxu1  ;;  %v3242_v5 = vpop.f32.mrb[47].mxu0 }
 0x2fb   : > { %v3292_v53 = vpop.f32.mrb[31].mxu1  ;;  %v5215_v1 = vadd.f32 %v3242_v5, %v3241_v44 }
 0x2fc   : > { %v3631_v35 = vadd.f32 %v3290_v14, %v3210_v24  ;;  %v3293_v26 = vadd.f32 %v3292_v53, %v3291_v48 }
 0x2fe   : > { %v3637_v22 = vadd.f32 %v3293_v26, %v3213_v36 }
 0x2ff   : > { %v3356_v4 = vpop.f32.mrb[48].mxu0 }
 0x300   : > { %v3294_v25 = vpop.f32.mrb[32].mxu1  ;;  %v3357_v61 = vpop.f32.mrb[49].mxu0 }
 0x301   : > { %v3295_v20 = vpop.f32.mrb[33].mxu1  ;;  %v3358_v30 = vadd.f32 %v3357_v61, %v3356_v4  ;;  %v3359_v39 = vpop.f32.mrb[50].mxu0 }
 0x302   : > { %v3296_v40 = vadd.f32 %v3295_v20, %v3294_v25  ;;  %v3297_v59 = vpop.f32.mrb[34].mxu1  ;;  %v3360_v62 = vpop.f32.mrb[51].mxu0 }
 0x303   : > { %v3298_v11 = vpop.f32.mrb[35].mxu1  ;;  %v3361_v8 = vadd.f32 %v3360_v62, %v3359_v39  ;;  %v5217_v15 = vadd.f32 %v3619_v60, %v3358_v30 }
 0x304   : > { %v3628_v57 = vadd.f32 %v3296_v40, %v5197_v50  ;;  %v3299_v56 = vadd.f32 %v3298_v11, %v3297_v59 }
 0x305   : > { %v5220_v17 = vadd.f32 %v3625_v23, %v3361_v8 }
 0x306   : > { %v3634_v24 = vadd.f32 %v3299_v56, %v5199_v58 }
 0x307   : > { %v3362_v36 = vpop.f32.mrb[52].mxu0 }
 0x308   : > { %v3300_v27 = vpop.f32.mrb[36].mxu1  ;;  %v3363_v28 = vpop.f32.mrb[53].mxu0 }
 0x309   : > { %v3301_v21 = vpop.f32.mrb[37].mxu1  ;;  %v3364_v49 = vadd.f32 %v3363_v28, %v3362_v36  ;;  %v3365_v47 = vpop.f32.mrb[54].mxu0 }
 0x30a   : > { %v3302_v12 = vadd.f32 %v3301_v21, %v3300_v27  ;;  %v3303_v13 = vpop.f32.mrb[38].mxu1  ;;  %v3366_v51 = vpop.f32.mrb[55].mxu0 }
 0x30b   : > { %v3304_v34 = vpop.f32.mrb[39].mxu1  ;;  %v3367_v29 = vadd.f32 %v3366_v51, %v3365_v47  ;;  %v5223_v60 = vadd.f32 %v3616_v16, %v3364_v49 }
 0x30c   : > { %v3643_v50 = vadd.f32 %v3302_v12, %v5201_v54  ;;  %v3305_v46 = vadd.f32 %v3304_v34, %v3303_v13 }
 0x30d   : > { %v5226_v23 = vadd.f32 %v3622_v10, %v3367_v29 }
 0x30e   : > { %v3649_v58 = vadd.f32 %v3305_v46, %v5203_v55 }
 0x30f   : > { %v3368_v31 = vpop.f32.mrb[56].mxu0 }
 0x310   : > { %v3306_v7 = vpop.f32.mrb[40].mxu1  ;;  %v3369_v43 = vpop.f32.mrb[57].mxu0 }
 0x311   : > { %v3307_v33 = vpop.f32.mrb[41].mxu1  ;;  %v3370_v37 = vadd.f32 %v3369_v43, %v3368_v31  ;;  %v3371_v52 = vpop.f32.mrb[58].mxu0 }
 0x312   : > { %v3308_v3 = vadd.f32 %v3307_v33, %v3306_v7  ;;  %v3309_v9 = vpop.f32.mrb[42].mxu1  ;;  %v3372_v63 = vpop.f32.mrb[59].mxu0 }
 0x313   : > { %v3310_v32 = vpop.f32.mrb[43].mxu1  ;;  %v3373_v6 = vadd.f32 %v3372_v63, %v3371_v52  ;;  %v5229_v16 = vadd.f32 %v3631_v35, %v3370_v37 }
 0x314   : > { %v3640_v54 = vadd.f32 %v3308_v3, %v5205_v0  ;;  %v3311_v19 = vadd.f32 %v3310_v32, %v3309_v9 }
 0x315   : > { %v5232_v10 = vadd.f32 %v3637_v22, %v3373_v6 }
 0x316   : > { %v3646_v55 = vadd.f32 %v3311_v19, %v5207_v42 }
 0x317   : > { %v3374_v18 = vpop.f32.mrb[60].mxu0 }
 0x318   : > { %v3312_v45 = vpop.f32.mrb[44].mxu1  ;;  %v3375_v44 = vpop.f32.mrb[61].mxu0 }
 0x319   : > { %v3313_v14 = vpop.f32.mrb[45].mxu1  ;;  %v3376_v48 = vadd.f32 %v3375_v44, %v3374_v18  ;;  %v3377_v5 = vpop.f32.mrb[62].mxu0  ;;  %v5268_v44 = vld [vmem:[%s5556_s16] ss:$0 sm:$0xff]  ;;  %s4098_s16 = scalar_lea.vmem %s5380_s28, 1024 }
 0x31a   : > { %v3314_v53 = vadd.f32 %v3313_v14, %v3312_v45  ;;  %v3315_v26 = vpop.f32.mrb[46].mxu1  ;;  %v3378_v4 = vpop.f32.mrb[63].mxu0  ;;  %p4099_p1 = scmp.ne.s32.totalorder %s5380_s28, %s4098_s16 }
 0x31b   : > { %v3316_v25 = vpop.f32.mrb[47].mxu1  ;;  %v3379_v61 = vadd.f32 %v3378_v4, %v3377_v5  ;;  %v5235_v35 = vadd.f32 %v3628_v57, %v3376_v48 }
 0x31c   : > { %v3655_v0 = vadd.f32 %v3314_v53, %v5209_v38  ;;  %v3317_v20 = vadd.f32 %v3316_v25, %v3315_v26  ;;  %p4100_p4 = pnand %p4099_p1, %p4492_p5 }
 0x31d   : > { %v5238_v22 = vadd.f32 %v3634_v24, %v3379_v61 }
 0x31e   : > { %v3661_v42 = vadd.f32 %v3317_v20, %v5211_v2  ;;  %p4101_p0 = pneg %p4100_p4 }
 0x31f   : > { %v3380_v30 = vpop.f32.mrb[64].mxu0 }
 0x320   : > { %v3318_v39 = vpop.f32.mrb[48].mxu1  ;;  %v3381_v40 = vpop.f32.mrb[65].mxu0 }
 0x321   : > { %v3319_v59 = vpop.f32.mrb[49].mxu1  ;;  %v3382_v62 = vadd.f32 %v3381_v40, %v3380_v30  ;;  %v3383_v11 = vpop.f32.mrb[66].mxu0 }
 0x322   : > { %v3320_v8 = vadd.f32 %v3319_v59, %v3318_v39  ;;  %v3321_v56 = vpop.f32.mrb[50].mxu1  ;;  %v3384_v36 = vpop.f32.mrb[67].mxu0 }
 0x323   : > { %v3322_v27 = vpop.f32.mrb[51].mxu1  ;;  %v3385_v28 = vadd.f32 %v3384_v36, %v3383_v11  ;;  %v5241_v57 = vadd.f32 %v3643_v50, %v3382_v62 }
 0x324   : > { %v3652_v38 = vadd.f32 %v3320_v8, %v5213_v41  ;;  %v3323_v21 = vadd.f32 %v3322_v27, %v3321_v56 }
 0x325   : > { %v5244_v24 = vadd.f32 %v3649_v58, %v3385_v28 }
 0x326   : > { %v3658_v2 = vadd.f32 %v3323_v21, %v5215_v1 }
 0x327   : > { %v3386_v49 = vpop.f32.mrb[68].mxu0 }
 0x328   : > { %v3387_v47 = vpop.f32.mrb[69].mxu0 }
 0x329   : > { %v3388_v12 = vadd.f32 %v3387_v47, %v3386_v49  ;;  %v3389_v13 = vpop.f32.mrb[70].mxu0 }
 0x32a   : > { %v3390_v51 = vpop.f32.mrb[71].mxu0 }
 0x32b   : > { %v3391_v34 = vadd.f32 %v3390_v51, %v3389_v13  ;;  %v5247_v29 = vadd.f32 %v3640_v54, %v3388_v12 }
 0x32d   : > { %v5249_v46 = vadd.f32 %v3646_v55, %v3391_v34  ;;  %v5262_v55 = vld [vmem:[%s5555_s15] ss:$0 sm:$0xff]  ;;  %s5560_s15 = sld [smem:[#allocation34_spill]] }
 0x32f   : > { %v3392_v31 = vpop.f32.mrb[72].mxu0 }
 0x330   : > { %v3393_v50 = vpop.f32.mrb[73].mxu0 }
 0x331   : > { %v3394_v7 = vadd.f32 %v3393_v50, %v3392_v31  ;;  %v3395_v43 = vpop.f32.mrb[74].mxu0 }
 0x332   : > { %v3396_v41 = vpop.f32.mrb[75].mxu0 }
 0x333   : > { %v3397_v33 = vadd.f32 %v3396_v41, %v3395_v43  ;;  %v5251_v58 = vadd.f32 %v3655_v0, %v3394_v7 }
 0x335   : > { %v5253_v37 = vadd.f32 %v3661_v42, %v3397_v33 }
 0x337   : > { %v3398_v1 = vpop.f32.mrb[76].mxu0 }
 0x338   : > { %v3399_v52 = vpop.f32.mrb[77].mxu0 }
 0x339   : > { %v3400_v3 = vadd.f32 %v3399_v52, %v3398_v1  ;;  %v3401_v9 = vpop.f32.mrb[78].mxu0 }
 0x33a   : > { %v3402_v63 = vpop.f32.mrb[79].mxu0 }
 0x33b   : > { %v3403_v32 = vadd.f32 %v3402_v63, %v3401_v9  ;;  %v5255_v6 = vadd.f32 %v3652_v38, %v3400_v3 }
 0x33d   : > { %v5257_v54 = vadd.f32 %v3658_v2, %v3403_v32 }
 0x348   : > { %v3570_v19 = vpop.f32.mrb[4].mxu1 }
 0x349   : > { %v3618_v18 = vadd.f32 %v5223_v60, %v3570_v19  ;;  %v2217_v45 = vpop.f32.mrb[5].mxu1 }
 0x34a   : > { %v3621_v14 = vadd.f32 %v5217_v15, %v2217_v45  ;;  %v3571_v48 = vpop.f32.mrb[6].mxu1 }
 0x34b   : > { %v2305_v5 = vmul.f32 %v3618_v18, %v5262_v55  ;;  %v3624_v53 = vadd.f32 %v5226_v23, %v3571_v48  ;;  %v2220_v26 = vpop.f32.mrb[7].mxu1 }
 0x34c   : > { %v2303_v4 = vmul.f32 %v3621_v14, %v5262_v55  ;;  %v3627_v25 = vadd.f32 %v5220_v17, %v2220_v26 }
 0x34d   : > { %v2328_v60 = vadd.f32 %v5268_v44, %v2305_v5  ;;  %v2306_v61 = vmul.f32 %v3624_v53, %v5262_v55 }
 0x34e   : > { %v2326_v0 = vadd.f32 %v5268_v44, %v2303_v4  ;;  %v2304_v20 = vmul.f32 %v3627_v25, %v5262_v55 }
 0x34f   : > { %v2329_v15 = vadd.f32 %v5268_v44, %v2306_v61  ;;  %v2344_v39 = vmax.f32 %v2328_v60, 0.0 }
 0x350   : > { %v2327_v42 = vadd.f32 %v5268_v44, %v2304_v20  ;;  %v3574_v30 = vpop.f32.mrb[8].mxu1  ;;  %v2342_v62 = vmax.f32 %v2326_v0, 0.0 }
 0x351   : > { %v2345_v23 = vmax.f32 %v2329_v15, 0.0  ;;  %v3630_v40 = vadd.f32 %v5235_v35, %v3574_v30  ;;  %v2233_v59 = vpop.f32.mrb[9].mxu1 }
 0x352   : > { %v2343_v17 = vmax.f32 %v2327_v42, 0.0  ;;  %v3633_v11 = vadd.f32 %v5229_v16, %v2233_v59  ;;  %v3575_v8 = vpop.f32.mrb[10].mxu1 }
 0x353   : > { %v2359_v56 = vpack.c.bf16 %v2345_v23, %v2344_v39  ;;  %v2309_v36 = vmul.f32 %v3630_v40, %v5262_v55  ;;  %v3636_v27 = vadd.f32 %v5238_v22, %v3575_v8  ;;  %v2236_v28 = vpop.f32.mrb[11].mxu1 }
 0x354   : > { %v2307_v38 = vmul.f32 %v3633_v11, %v5262_v55  ;;  %v3639_v21 = vadd.f32 %v5232_v10, %v2236_v28  ;;  %v2358_v2 = vpack.c.bf16 %v2343_v17, %v2342_v62 }
 0x355   : > { %v2332_v49 = vadd.f32 %v5268_v44, %v2309_v36  ;;  %v2310_v35 = vmul.f32 %v3636_v27, %v5262_v55  ;;  %v5325_v27 = vld [vmem:[%s5558_s13] ss:$0 sm:$0xff] }
 0x356   : > { %v2330_v47 = vadd.f32 %v5268_v44, %v2307_v38  ;;  %v2308_v16 = vmul.f32 %v3639_v21, %v5262_v55  ;;  %3600 = vmatprep.mubr.bf16.mxu0 %v2358_v2  ;;  %v3947_v2 = vld [vmem:[%s4631_s9] sm:$0xff]  }
 0x357   : > { %v2333_v12 = vadd.f32 %v5268_v44, %v2310_v35  ;;  %3601 = vmatmul.mubr.bf16.vlgmr.msra.gmra.mrb[80].mxu0 %v2359_v56  ;;  %v2348_v51 = vmax.f32 %v2332_v49, 0.0  ;;  %v2573_v49 = vunpack.c.l.bf16 %v3947_v2 }
 0x358   : > { %v2331_v22 = vadd.f32 %v5268_v44, %v2308_v16  ;;  %v3578_v13 = vpop.f32.mrb[12].mxu1  ;;  %v2346_v50 = vmax.f32 %v2330_v47, 0.0 }
 0x359   : > { %v2349_v34 = vmax.f32 %v2333_v12, 0.0  ;;  %v3642_v10 = vadd.f32 %v5247_v29, %v3578_v13  ;;  %v2249_v31 = vpop.f32.mrb[13].mxu1 }
 0x35a   : > { %v2347_v7 = vmax.f32 %v2331_v22, 0.0  ;;  %v3645_v43 = vadd.f32 %v5241_v57, %v2249_v31  ;;  %v3579_v41 = vpop.f32.mrb[14].mxu1 }
 0x35b   : > { %v2313_v33 = vmul.f32 %v3642_v10, %v5262_v55  ;;  %v3648_v1 = vadd.f32 %v5249_v46, %v3579_v41  ;;  %v2252_v52 = vpop.f32.mrb[15].mxu1  ;;  %v2361_v3 = vpack.c.bf16 %v2349_v34, %v2348_v51  ;;  %v2574_v51 = vunpack.c.h.bf16 %v3947_v2 }
 0x35c   : > { %v2311_v9 = vmul.f32 %v3645_v43, %v5262_v55  ;;  %v3651_v63 = vadd.f32 %v5244_v24, %v2252_v52  ;;  %v2360_v32 = vpack.c.bf16 %v2347_v7, %v2346_v50  ;;  %v3948_v52 = vld [vmem:[%s4631_s9 + $0x18] sm:$0xff]  }
 0x35d   : > { %v2336_v19 = vadd.f32 %v5268_v44, %v2313_v33  ;;  %v2314_v29 = vmul.f32 %v3648_v1, %v5262_v55 }
 0x35e   : > { %v2334_v18 = vadd.f32 %v5268_v44, %v2311_v9  ;;  %v2312_v57 = vmul.f32 %v3651_v63, %v5262_v55  ;;  %3604 = vmatprep.mubr.bf16.mxu0 %v2360_v32 }
 0x35f   : > { %v2337_v45 = vadd.f32 %v5268_v44, %v2314_v29  ;;  %3605 = vmatmul.mubr.bf16.gmra.mrb[84].mxu0 %v2361_v3  ;;  %v2352_v48 = vmax.f32 %v2336_v19, 0.0  ;;  %v2579_v3 = vunpack.c.l.bf16 %v3948_v52  ;;  %v3949_v29 = vld [vmem:[%s4631_s9 + $0x10] sm:$0xff]  }
 0x360   : > { %v2335_v46 = vadd.f32 %v5268_v44, %v2312_v57  ;;  %v3582_v14 = vpop.f32.mrb[16].mxu1  ;;  %v2350_v26 = vmax.f32 %v2334_v18, 0.0  ;;  %v2577_v18 = vunpack.c.l.bf16 %v3949_v29 }
 0x361   : > { %v2353_v5 = vmax.f32 %v2337_v45, 0.0  ;;  %v3654_v24 = vadd.f32 %v5255_v6, %v3582_v14  ;;  %v2265_v53 = vpop.f32.mrb[17].mxu1 }
 0x362   : > { %v2351_v4 = vmax.f32 %v2335_v46, 0.0  ;;  %v3657_v25 = vadd.f32 %v5251_v58, %v2265_v53  ;;  %v3583_v60 = vpop.f32.mrb[18].mxu1 }
 0x363   : > { %v2317_v61 = vmul.f32 %v3654_v24, %v5262_v55  ;;  %v3660_v0 = vadd.f32 %v5257_v54, %v3583_v60  ;;  %v2268_v20 = vpop.f32.mrb[19].mxu1  ;;  %v2363_v15 = vpack.c.bf16 %v2353_v5, %v2352_v48  ;;  %v2580_v48 = vunpack.c.h.bf16 %v3948_v52  ;;  %v3953_v52 = vld [vmem:[%s4631_s9 + $0x30] sm:$0xff]  }
 0x364   : > { %v2315_v42 = vmul.f32 %v3657_v25, %v5262_v55  ;;  %v3663_v30 = vadd.f32 %v5253_v37, %v2268_v20  ;;  %v2362_v39 = vpack.c.bf16 %v2351_v4, %v2350_v26  ;;  %v2578_v4 = vunpack.c.h.bf16 %v3949_v29 }
 0x365   : > { %v2340_v23 = vadd.f32 %v5268_v44, %v2317_v61  ;;  %v2318_v6 = vmul.f32 %v3660_v0, %v5262_v55 }
 0x366   : > { %v2338_v40 = vadd.f32 %v5268_v44, %v2315_v42  ;;  %v2316_v58 = vmul.f32 %v3663_v30, %v5262_v55  ;;  %3608 = vmatprep.mubr.bf16.mxu0 %v2362_v39  ;;  %v5320_v55 = vld [vmem:[%s5557_s29] ss:$0 sm:$0xff]  ;;  %s4104_s29 = scalar_lea.vmem %s4103_s17, 2048 }
 0x367   : > { %v2341_v59 = vadd.f32 %v5268_v44, %v2318_v6  ;;  %3609 = vmatmul.mubr.bf16.gmra.mrb[88].mxu0 %v2363_v15  ;;  %v2356_v62 = vmax.f32 %v2340_v23, 0.0  ;;  %v3950_v6 = vld [vmem:[%s4631_s9 + $0x28] sm:$0xff]   ;;  %p4106_p2 = scmp.lt.s32.totalorder %s4104_s29, %s4098_s16 }
 0x368   : > { %v2339_v54 = vadd.f32 %v5268_v44, %v2316_v58  ;;  %v2354_v37 = vmax.f32 %v2338_v40, 0.0  ;;  %v3946_v44 = vld [vmem:[%s4631_s9 + $0x8] sm:$0xff]   ;;  %v2583_v40 = vunpack.c.l.bf16 %v3950_v6 }
 0x369   : > { %v2357_v17 = vmax.f32 %v2341_v59, 0.0  ;;  %v2575_v28 = vunpack.c.l.bf16 %v3946_v44  ;;  %v2576_v16 = vunpack.c.h.bf16 %v3946_v44  ;;  %v2584_v44 = vunpack.c.h.bf16 %v3950_v6  ;;  %p4107_p3 = por %p4106_p2, %p4105_p9 }
 0x36a   : > { %v2355_v11 = vmax.f32 %v2339_v54, 0.0 }
 0x36b   : > { %v2365_v8 = vpack.c.bf16 %v2357_v17, %v2356_v62  ;;  %v3951_v17 = vld [vmem:[%s4631_s9 + $0x20] sm:$0xff]   ;;  %p4108_p7 = pnand %p4107_p3, %p4101_p0 }
 0x36c   : > { %v2364_v56 = vpack.c.bf16 %v2355_v11, %v2354_v37  ;;  %v2581_v37 = vunpack.c.l.bf16 %v3951_v17 }
 0x36e   : > { %3612 = vmatprep.mubr.bf16.mxu0 %v2364_v56 }
 0x36f   : > { %3613 = vmatmul.mubr.bf16.gmra.mrb[92].mxu0 %v2365_v8 }
 0x42a   : > { %v3602_v36 = vpop.f32.mrb[80].mxu0 }
 0x42b   : > { %v2536_v38 = vmul.f32 %v3602_v36, %v5320_v55  ;;  %v2464_v21 = vpop.f32.mrb[81].mxu0 }
 0x42c   : > { %v2534_v35 = vmul.f32 %v5320_v55, %v2464_v21  ;;  %v3603_v47 = vpop.f32.mrb[82].mxu0 }
 0x42d   : > { %v2559_v12 = vadd.f32 %v5325_v27, %v2536_v38  ;;  %v2537_v22 = vmul.f32 %v3603_v47, %v5320_v55  ;;  %v2467_v13 = vpop.f32.mrb[83].mxu0 }
 0x42e   : > { %v2557_v34 = vadd.f32 %v5325_v27, %v2534_v35  ;;  %v2535_v10 = vmul.f32 %v5320_v55, %v2467_v13 }
 0x42f   : > { %v2591_v31 = vadd.f32 %v2575_v28, %v2559_v12  ;;  %v2560_v50 = vadd.f32 %v5325_v27, %v2537_v22 }
 0x430   : > { %v2589_v7 = vadd.f32 %v2573_v49, %v2557_v34  ;;  %v2558_v43 = vadd.f32 %v5325_v27, %v2535_v10  ;;  %v2582_v49 = vunpack.c.h.bf16 %v3951_v17 }
 0x431   : > { %v2592_v41 = vadd.f32 %v2576_v16, %v2560_v50  ;;  %v2607_v9 = vmax.f32 %v2591_v31, 0.0  ;;  %v3952_v50 = vld [vmem:[%s4631_s9 + $0x38] sm:$0xff]   ;;  %s2715_s9 = sadd.s32 %s3697_s24, %s3106_s20 }
 0x432   : > { %v2590_v33 = vadd.f32 %v2574_v51, %v2558_v43  ;;  %v3606_v1 = vpop.f32.mrb[84].mxu0  ;;  %v2605_v57 = vmax.f32 %v2589_v7, 0.0  ;;  %v2587_v7 = vunpack.c.l.bf16 %v3952_v50  ;;  %v2588_v29 = vunpack.c.h.bf16 %v3952_v50  ;;  %s3083_s10 = sshll.u32 %s2715_s9, 6 }
 0x433   : > { %v2608_v63 = vmax.f32 %v2592_v41, 0.0  ;;  %v2540_v32 = vmul.f32 %v3606_v1, %v5320_v55  ;;  %v2480_v19 = vpop.f32.mrb[85].mxu0  ;;  %s5385_s3 = scalar_lea.hbm %s5560_s15, %s3083_s10 }
 0x434   : > { %v2606_v45 = vmax.f32 %v2590_v33, 0.0  ;;  %v2538_v46 = vmul.f32 %v5320_v55, %v2480_v19  ;;  %v3607_v14 = vpop.f32.mrb[86].mxu0 }
 0x435   : > { %v3115_v5 = vpack.c.bf16 %v2608_v63, %v2607_v9  ;;  %v2563_v24 = vadd.f32 %v5325_v27, %v2540_v32  ;;  %v2541_v53 = vmul.f32 %v3607_v14, %v5320_v55  ;;  %v2483_v26 = vpop.f32.mrb[87].mxu0  ;;  %v2586_v14 = vunpack.c.h.bf16 %v3953_v52 }
 0x436   : > { %v3110_v25 = vpack.c.bf16 %v2606_v45, %v2605_v57  ;;  %v2561_v60 = vadd.f32 %v5325_v27, %v2538_v46  ;;  %v2539_v61 = vmul.f32 %v5320_v55, %v2483_v26 }
 0x437   : > { %3147 = vst [vmem:[%s5347_s12 + $0x8] sm:$0xff] %v3115_v5   ;;  %v2595_v0 = vadd.f32 %v2579_v3, %v2563_v24  ;;  %v2564_v20 = vadd.f32 %v5325_v27, %v2541_v53  ;;  %v2585_v3 = vunpack.c.l.bf16 %v3953_v52 }
 0x438   : > { %3111 = vst [vmem:[%s5347_s12] sm:$0xff] %v3110_v25   ;;  %v2593_v15 = vadd.f32 %v2577_v18, %v2561_v60  ;;  %v2562_v42 = vadd.f32 %v5325_v27, %v2539_v61 }
 0x439   : > { %v2596_v30 = vadd.f32 %v2580_v48, %v2564_v20  ;;  %v2611_v58 = vmax.f32 %v2595_v0, 0.0 }
 0x43a   : > { %v2594_v39 = vadd.f32 %v2578_v4, %v2562_v42  ;;  %v3610_v23 = vpop.f32.mrb[88].mxu0  ;;  %v2609_v11 = vmax.f32 %v2593_v15, 0.0 }
 0x43b   : > { %v2612_v59 = vmax.f32 %v2596_v30, 0.0  ;;  %v2544_v54 = vmul.f32 %v3610_v23, %v5320_v55  ;;  %v2496_v62 = vpop.f32.mrb[89].mxu0 }
 0x43c   : > { %v2610_v8 = vmax.f32 %v2594_v39, 0.0  ;;  %v2542_v56 = vmul.f32 %v5320_v55, %v2496_v62  ;;  %v3611_v36 = vpop.f32.mrb[90].mxu0 }
 0x43d   : > { %v3125_v28 = vpack.c.bf16 %v2612_v59, %v2611_v58  ;;  %v2567_v38 = vadd.f32 %v5325_v27, %v2544_v54  ;;  %v2545_v21 = vmul.f32 %v3611_v36, %v5320_v55  ;;  %v2499_v2 = vpop.f32.mrb[91].mxu0 }
 0x43e   : > { %v3120_v35 = vpack.c.bf16 %v2610_v8, %v2609_v11  ;;  %v2565_v47 = vadd.f32 %v5325_v27, %v2542_v56  ;;  %v2543_v16 = vmul.f32 %v5320_v55, %v2499_v2 }
 0x43f   : > { %3149 = vst [vmem:[%s5347_s12 + $0x18] sm:$0xff] %v3125_v28   ;;  %v2599_v12 = vadd.f32 %v2583_v40, %v2567_v38  ;;  %v2568_v22 = vadd.f32 %v5325_v27, %v2545_v21 }
 0x440   : > { %3148 = vst [vmem:[%s5347_s12 + $0x10] sm:$0xff] %v3120_v35   ;;  %v2597_v13 = vadd.f32 %v2581_v37, %v2565_v47  ;;  %v2566_v51 = vadd.f32 %v5325_v27, %v2543_v16 }
 0x441   : > { %v2600_v34 = vadd.f32 %v2584_v44, %v2568_v22  ;;  %v2615_v43 = vmax.f32 %v2599_v12, 0.0 }
 0x442   : > { %v2598_v10 = vadd.f32 %v2582_v49, %v2566_v51  ;;  %v3614_v31 = vpop.f32.mrb[92].mxu0  ;;  %v2613_v9 = vmax.f32 %v2597_v13, 0.0 }
 0x443   : > { %v2616_v41 = vmax.f32 %v2600_v34, 0.0  ;;  %v2548_v33 = vmul.f32 %v3614_v31, %v5320_v55  ;;  %v2512_v1 = vpop.f32.mrb[93].mxu0 }
 0x444   : > { %v2614_v63 = vmax.f32 %v2598_v10, 0.0  ;;  %v2546_v32 = vmul.f32 %v5320_v55, %v2512_v1  ;;  %v3615_v19 = vpop.f32.mrb[94].mxu0 }
 0x445   : > { %v3135_v18 = vpack.c.bf16 %v2616_v41, %v2615_v43  ;;  %v2571_v57 = vadd.f32 %v5325_v27, %v2548_v33  ;;  %v2549_v45 = vmul.f32 %v3615_v19, %v5320_v55  ;;  %v2515_v46 = vpop.f32.mrb[95].mxu0 }
 0x446   : > { %v3130_v48 = vpack.c.bf16 %v2614_v63, %v2613_v9  ;;  %v2569_v5 = vadd.f32 %v5325_v27, %v2546_v32  ;;  %v2547_v24 = vmul.f32 %v5320_v55, %v2515_v46 }
 0x447   : > { %3151 = vst [vmem:[%s5347_s12 + $0x28] sm:$0xff] %v3135_v18   ;;  %v2603_v53 = vadd.f32 %v2587_v7, %v2571_v57  ;;  %v2572_v26 = vadd.f32 %v5325_v27, %v2549_v45 }
 0x448   : > { %3150 = vst [vmem:[%s5347_s12 + $0x20] sm:$0xff] %v3130_v48   ;;  %v2601_v4 = vadd.f32 %v2585_v3, %v2569_v5  ;;  %v2570_v25 = vadd.f32 %v5325_v27, %v2547_v24 }
 0x449   : > { %v2604_v60 = vadd.f32 %v2588_v29, %v2572_v26  ;;  %v2619_v0 = vmax.f32 %v2603_v53, 0.0 }
 0x44a   : > { %v2602_v61 = vadd.f32 %v2586_v14, %v2570_v25  ;;  %v2617_v55 = vmax.f32 %v2601_v4, 0.0 }
 0x44b   : > { %v2620_v20 = vmax.f32 %v2604_v60, 0.0 }
 0x44c   : > { %v2618_v15 = vmax.f32 %v2602_v61, 0.0 }
 0x44d   : > { %v3145_v42 = vpack.c.bf16 %v2620_v20, %v2619_v0 }
 0x44e   : > { %v3140_v30 = vpack.c.bf16 %v2618_v15, %v2617_v55 }
 0x44f   : > { %3153 = vst [vmem:[%s5347_s12 + $0x38] sm:$0xff] %v3145_v42  }
 0x450   : > { %3152 = vst [vmem:[%s5347_s12 + $0x30] sm:$0xff] %v3140_v30  }
 0x451   : > { %4111 = shalt.err (!%p4108_p7)
}
 0x452   : > { %s4112_s8 = scalar_lea.hbm %s5385_s3, 1024  ;;  %s4116_s12 = scalar_lea.hbm %s5560_s15, 6144 }
 0x453   : > { %p4113_p13 = scmp.ne.s32.totalorder %s5385_s3, %s4112_s8  ;;  %p4117_p6 = scmp.lt.u32.totalorder %s5385_s3, %s5560_s15 }
 0x454   : > { %p4118_p8 = scmp.lt.u32.totalorder %s4116_s12, %s4112_s8  ;;  %p4120_p1 = scmp.lt.u32.totalorder %s4112_s8, %s5385_s3 }
 0x455   : > { %p4114_p10 = pnand %p4113_p13, %p4492_p5 }
 0x456   : > { %p4119_p11 = por %p4118_p8, %p4117_p6 }
 0x457   : > { %p4115_p12 = pneg %p4114_p10 }
 0x458   : > { %p4121_p4 = por %p4120_p1, %p4119_p11 }
 0x45a   : > { %p4122_p0 = pnand %p4121_p4, %p4115_p12 }
 0x45c   : > { %4125 = shalt.err (!%p4122_p0)
}
 0x45d   : > { %s4242_s20 = smov 64   ;;  %s4243_s9 = smov 4  }
 0x45e   : > { %3714 = dma.vmem_to_hbm [thread:$0]  (%p4492_p5), %s5380_s28, 1024, %s5385_s3, %s2702_s7, %s4242_s20, %s4242_s20, %s4243_s9  }
 0x45f PF: > { %s5561_s10 = sld [smem:[#allocation17_spill]]  ;;  %s5562_s25 = sld [smem:[#allocation22_spill]] }
 0x460   : > { %p3744_p9 = scmp.ge.s32.totalorder %s4232_s27, 2 }
 0x465   : > { %s2733_s14 = sand.u32 1, %s5561_s10   ;;  %p5563_p2 = scmp.ne.s32.totalorder %s5562_s25, 0 }
 0x466   : > { %s2734_s16 = scalar_lea.sflag [#allocation4], %s2733_s14 }
 0x467   : > { %p3734_p3 = pnand %p3744_p9, %p5563_p2 }
 0x469   : > { %4187 = dma.done.wait (!%p3734_p3), %s2734_s16, 1024  }
 0x46a   : > { %4189 = vsyncadd (!%p3734_p3), %s2734_s16, 4294966272  ;;  %s31_s27 = sadd.s32 1, %s4232_s27   ;;  %s5564_s23 = sld [smem:[#allocation20_spill]] }
 0x46b   : > { %p28_p7 = scmp.ge.s32.totalorder %s31_s27, 8   ;;  %s5565_s6 = sld [smem:[#allocation23_spill]] }
 0x46c   : > { %s5566_s17 = smov %s4196_s18  ;;  %s5567_s18 = smov %s4200_s19 }
 0x46d   : > { %s5568_s19 = smov %s4587_s0  ;;  %s5569_s20 = smov %s4208_s21 }
 0x46e   : > { %s5570_s21 = smov %s4212_s22  ;;  %s5571_s22 = smov %s4571_s2 }
 0x46f   : > { %s5572_s24 = smov %s4228_s26  ;;  %s5573_s25 = smov %s5576_s11 }
 0x470   :  { %30 = sbr.rel (!%p28_p7) target bundleno = 24 (0x18), region = 136 }
 0x471   : > { %s5574_s26 = smov %s5565_s6 }
 0x477   :  { %2739 = vsyncpa [#allocation3], 1 }
 0x478   :  { %2741 = vsyncpa [#allocation3 + $0x1], 1 }
 0x479   :  { %2742 = vsyncpa [#allocation6], 1 }
 0x47a   :  { %2744 = vsyncpa [#allocation6 + $0x1], 1 }
 0x47b   :  { %2745 = vsyncpa [#allocation9], 1 }
 0x47c   :  { %2746 = vsyncpa [#allocation4], 1 }
 0x47d   :  { %2748 = vsyncpa [#allocation4 + $0x1], 1 }

</bundles_post_ra>
